<compile_context>
chip_gen: v5e
topology: v5e:2x2
jax: 0.10.0
libtpu: 0.0.40
codegen_flags: <defaults>
</compile_context>

<pallas_src>
import functools
import math

import jax
import jax.numpy as jnp
from jax.experimental import pallas as pl
from jax.experimental.pallas import tpu as pltpu


def _round_up(x: int, m: int) -> int:
    return (x + m - 1) // m * m


def _aspp_kernel(x_ref, w_ref, o_ref, *acc_scratch, M, K, rate, Wp, n_ci):
    """One (image, Cout-tile, Cin-tile) grid step of dilated conv + ReLU.

    x_ref : [R, cin_t]            flat, padded input slab (R = Hp*Wp + tail)
    w_ref : [K*K, cin_t, cout_t]  one (cin_t, cout_t) matrix per tap
    o_ref : [M, cout_t]           flat lane-dense output tile (M = H*Wp)
    acc_scratch (optional): [M, cout_t] f32 accumulator, only when n_ci > 1.
    """
    # Value-chained tap accumulation: K*K contiguous-row-window matmuls,
    # summed as values (single VMEM write per grid step, no per-tap RMW).
    acc = None
    for kh in range(K):
        for kw in range(K):
            base = (kh * Wp + kw) * rate          # static row offset
            patch = x_ref[base:base + M, :]        # contiguous 2-D window
            part = jnp.dot(patch, w_ref[kh * K + kw],
                           preferred_element_type=jnp.float32)
            acc = part if acc is None else acc + part

    if n_ci == 1:
        # Single reduction step: no scratch needed, store ReLU'd result now.
        o_ref[...] = jnp.maximum(acc, 0.0).astype(o_ref.dtype)
    else:
        acc_ref, = acc_scratch
        ci = pl.program_id(2)

        @pl.when(ci == 0)
        def _init():
            acc_ref[...] = acc                     # init folded into first write

        @pl.when(ci > 0)
        def _accum():
            acc_ref[...] = acc_ref[...] + acc

        @pl.when(ci == n_ci - 1)
        def _finish():
            o_ref[...] = jnp.maximum(acc_ref[...], 0.0).astype(o_ref.dtype)


def aspp_module_forward(x_nchw, weight, rate, *,
                        compute_dtype=jnp.bfloat16,
                        out_dtype=jnp.float32):
    """ASPP_module.forward: dilated conv2d (no bias) + ReLU.

    x_nchw : [N, Cin, H, W]     (PyTorch NCHW convention)
    weight : [Cout, Cin, K, K],  K = 1 if rate == 1 else 3
    Returns [N, Cout, H, W] in out_dtype (float32 by default).
    """
    N, Cin, H, W = x_nchw.shape
    Cout, _, K, _ = weight.shape
    pad = 0 if K == 1 else rate
    Hp, Wp = H + 2 * pad, W + 2 * pad
    extra = (K - 1) * rate          # tail rows so the last tap's window stays in-bounds
    M = H * Wp                      # computed rows per image (includes halo garbage cols)
    R = Hp * Wp + extra             # flat input rows per image

    # ---- channel tiling -----------------------------------------------------
    cout_pad = _round_up(Cout, 128)                # lane-dense output
    if cout_pad <= 512:
        cout_t = cout_pad                          # single Cout tile: input streamed once/ci
    elif cout_pad % 256 == 0:
        cout_t = 256                               # TODO(synk): prefer 128 tiles on v5e
    else:
        cout_t = 128
    if Cin <= 256:
        cin_pad = cin_t = Cin                      # small Cin: no padding / no reduction tiling
    else:
        cin_pad = _round_up(Cin, 128)
        cin_t = 256 if cin_pad % 256 == 0 else 128
    n_co = cout_pad // cout_t
    n_ci = cin_pad // cin_t

    # ---- host-side layout glue (NCHW interface -> flat NHWC slab) ----------
    x = jnp.transpose(x_nchw, (0, 2, 3, 1)).astype(compute_dtype)
    x = jnp.pad(x, ((0, 0), (pad, pad), (pad, pad), (0, cin_pad - Cin)))
    x = x.reshape(N, Hp * Wp, cin_pad)
    if extra:
        x = jnp.pad(x, ((0, 0), (0, extra), (0, 0)))

    w = jnp.transpose(weight, (2, 3, 1, 0)).reshape(K * K, Cin, Cout)
    w = jnp.pad(w, ((0, 0), (0, cin_pad - Cin), (0, cout_pad - Cout)))
    w = w.astype(compute_dtype)

    # ---- VMEM budget from the real (double-buffered) block sizes -----------
    cbytes = jnp.dtype(compute_dtype).itemsize
    obytes = jnp.dtype(out_dtype).itemsize
    in_blk = R * cin_t * cbytes
    w_blk = K * K * cin_t * cout_t * cbytes
    out_blk = M * cout_t * obytes
    acc_blk = M * cout_t * 4 if n_ci > 1 else 0
    need = 2 * (in_blk + w_blk + out_blk) + acc_blk
    vmem_limit = max(need + (need >> 2) + (4 << 20), 32 << 20)
    try:
        cap = pltpu.get_tpu_info().vmem_capacity_bytes
        vmem_limit = min(vmem_limit, max(cap - (16 << 20), need + (4 << 20)))
    except Exception:
        vmem_limit = min(vmem_limit, 64 << 20)

    kernel = functools.partial(_aspp_kernel, M=M, K=K, rate=rate, Wp=Wp, n_ci=n_ci)
    scratch = [pltpu.VMEM((M, cout_t), jnp.float32)] if n_ci > 1 else []

    out_wide = pl.pallas_call(
        kernel,
        out_shape=jax.ShapeDtypeStruct((N, M, cout_pad), out_dtype),
        grid_spec=pltpu.PrefetchScalarGridSpec(
            num_scalar_prefetch=0,
            grid=(N, n_co, n_ci),
            in_specs=[
                # flat padded input slab: full row extent, one Cin tile
                pl.BlockSpec((None, R, cin_t), lambda n, co, ci: (n, 0, ci)),
                # weights: all taps, one (Cin tile, Cout tile) block
                pl.BlockSpec((K * K, cin_t, cout_t), lambda n, co, ci: (0, ci, co)),
            ],
            # lane-dense flat output tile; block index constant across Cin axis
            out_specs=pl.BlockSpec((None, M, cout_t), lambda n, co, ci: (n, 0, co)),
            scratch_shapes=scratch,
        ),
        compiler_params=pltpu.CompilerParams(
            dimension_semantics=("parallel", "parallel", "arbitrary"),
            vmem_limit_bytes=int(vmem_limit),
        ),
    )(x, w)

    # drop halo-garbage columns / channel padding, back to NCHW
    out = out_wide.reshape(N, H, Wp, cout_pad)[:, :, :W, :Cout]
    return jnp.transpose(out, (0, 3, 1, 2))


def kaiming_normal_conv_weight(key, cout, cin, k):
    # torch.nn.init.kaiming_normal_ default: fan_in, gain=sqrt(2)
    fan_in = cin * k * k
    std = math.sqrt(2.0 / fan_in)
    return jax.random.normal(key, (cout, cin, k, k), dtype=jnp.float32) * std


def _reference(x, weight, rate):
    K = weight.shape[-1]
    pad = 0 if K == 1 else rate
    y = jax.lax.conv_general_dilated(
        x, weight,
        window_strides=(1, 1),
        padding=((pad, pad), (pad, pad)),
        rhs_dilation=(rate, rate),
        dimension_numbers=("NCHW", "OIHW", "NCHW"),
        precision=jax.lax.Precision.HIGHEST)
    return jnp.maximum(y, 0.0)


if __name__ == "__main__":
    key = jax.random.PRNGKey(0)

    # (N, Cin, Cout, H, W, rate)
    configs = [
        (2, 4, 4, 16, 16, 2),    # ASPP_module(4, 4, rate=2): 3x3 dilated conv
        (2, 4, 4, 16, 16, 1),    # rate=1 branch: 1x1 conv
        (1, 128, 8, 8, 8, 3),    # deep-Cin path (MXU-deep per-tap contraction)
    ]
    for N, Cin, Cout, H, W, rate in configs:
        key, key_x, key_w = jax.random.split(key, 3)
        ksize = 1 if rate == 1 else 3
        x = jax.random.normal(key_x, (N, Cin, H, W), dtype=jnp.float32)
        wgt = kaiming_normal_conv_weight(key_w, Cout, Cin, ksize)

        # float32 compute path: tight check against XLA conv at HIGHEST precision.
        fwd32 = jax.jit(functools.partial(aspp_module_forward, rate=rate,
                                          compute_dtype=jnp.float32))
        out32 = jax.block_until_ready(fwd32(x, wgt))
        ref32 = _reference(x, wgt, rate)
        assert out32.shape == ref32.shape, (out32.shape, ref32.shape)
        assert jnp.allclose(out32, ref32, atol=2e-4, rtol=2e-4), (
            f"f32 mismatch for config N={N} Cin={Cin} Cout={Cout} rate={rate}")

        # default bfloat16 compute path: compare against bf16-cast reference.
        fwd16 = jax.jit(functools.partial(aspp_module_forward, rate=rate))
        out16 = jax.block_until_ready(fwd16(x, wgt))
        ref16 = _reference(x.astype(jnp.bfloat16).astype(jnp.float32),
                           wgt.astype(jnp.bfloat16).astype(jnp.float32), rate)
        assert jnp.allclose(out16, ref16, atol=1e-3, rtol=1e-3), (
            f"bf16 mismatch for config N={N} Cin={Cin} Cout={Cout} rate={rate}")

    print("KERNEL_OK")
</pallas_src>

<mosaic_0001>
module attributes {stable_mosaic.version = 11 : i64} {
  func.func @_aspp_kernel(%arg0: i32, %arg1: i32, %arg2: i32, %arg3: memref<1x404x4xf32, #tpu.memory_space<vmem>>, %arg4: memref<9x4x128xf32, #tpu.memory_space<vmem>>, %arg5: memref<1x320x128xf32, #tpu.memory_space<vmem>>) attributes {dimension_semantics = [#tpu.dimension_semantics<parallel>, #tpu.dimension_semantics<parallel>, #tpu.dimension_semantics<arbitrary>], iteration_bounds = array<i64: 2, 1, 1>, scalar_prefetch = 0 : i64, scratch_operands = 0 : i64, tpu.core_type = #tpu.core_type<tc>, window_params = [{transform_indices = @transform_0, window_bounds = array<i64: 1, 404, 4>}, {transform_indices = @transform_1, window_bounds = array<i64: 9, 4, 128>}, {transform_indices = @transform_2, window_bounds = array<i64: 1, 320, 128>}]} {
    %c0 = arith.constant 0 : index
    %c0_0 = arith.constant 0 : index
    %c0_1 = arith.constant 0 : index
    %0 = vector.load %arg3[%c0, %c0_0, %c0_1] : memref<1x404x4xf32, #tpu.memory_space<vmem>>, vector<1x320x4xf32>
    %1 = vector.shape_cast %0 : vector<1x320x4xf32> to vector<320x4xf32>
    %c0_2 = arith.constant 0 : index
    %c0_3 = arith.constant 0 : index
    %c0_4 = arith.constant 0 : index
    %2 = vector.load %arg4[%c0_2, %c0_3, %c0_4] : memref<9x4x128xf32, #tpu.memory_space<vmem>>, vector<1x4x128xf32>
    %3 = vector.shape_cast %2 : vector<1x4x128xf32> to vector<4x128xf32>
    %cst = arith.constant dense<0.000000e+00> : vector<320x128xf32>
    %4 = tpu.matmul %1, %3, %cst {dimension_numbers = #tpu.dot_dimension_numbers<[1], [0], [0], [1], [0, 0, 1, 1], [], []>} : vector<320x4xf32>, vector<4x128xf32>, vector<320x128xf32> -> vector<320x128xf32>
    %c0_5 = arith.constant 0 : index
    %c2 = arith.constant 2 : index
    %c0_6 = arith.constant 0 : index
    %5 = vector.load %arg3[%c0_5, %c2, %c0_6] : memref<1x404x4xf32, #tpu.memory_space<vmem>>, vector<1x320x4xf32>
    %6 = vector.shape_cast %5 : vector<1x320x4xf32> to vector<320x4xf32>
    %c1 = arith.constant 1 : index
    %c0_7 = arith.constant 0 : index
    %c0_8 = arith.constant 0 : index
    %7 = vector.load %arg4[%c1, %c0_7, %c0_8] : memref<9x4x128xf32, #tpu.memory_space<vmem>>, vector<1x4x128xf32>
    %8 = vector.shape_cast %7 : vector<1x4x128xf32> to vector<4x128xf32>
    %cst_9 = arith.constant dense<0.000000e+00> : vector<320x128xf32>
    %9 = tpu.matmul %6, %8, %cst_9 {dimension_numbers = #tpu.dot_dimension_numbers<[1], [0], [0], [1], [0, 0, 1, 1], [], []>} : vector<320x4xf32>, vector<4x128xf32>, vector<320x128xf32> -> vector<320x128xf32>
    %10 = arith.addf %4, %9 : vector<320x128xf32>
    %c0_10 = arith.constant 0 : index
    %c4 = arith.constant 4 : index
    %c0_11 = arith.constant 0 : index
    %11 = vector.load %arg3[%c0_10, %c4, %c0_11] : memref<1x404x4xf32, #tpu.memory_space<vmem>>, vector<1x320x4xf32>
    %12 = vector.shape_cast %11 : vector<1x320x4xf32> to vector<320x4xf32>
    %c2_12 = arith.constant 2 : index
    %c0_13 = arith.constant 0 : index
    %c0_14 = arith.constant 0 : index
    %13 = vector.load %arg4[%c2_12, %c0_13, %c0_14] : memref<9x4x128xf32, #tpu.memory_space<vmem>>, vector<1x4x128xf32>
    %14 = vector.shape_cast %13 : vector<1x4x128xf32> to vector<4x128xf32>
    %cst_15 = arith.constant dense<0.000000e+00> : vector<320x128xf32>
    %15 = tpu.matmul %12, %14, %cst_15 {dimension_numbers = #tpu.dot_dimension_numbers<[1], [0], [0], [1], [0, 0, 1, 1], [], []>} : vector<320x4xf32>, vector<4x128xf32>, vector<320x128xf32> -> vector<320x128xf32>
    %16 = arith.addf %10, %15 : vector<320x128xf32>
    %c0_16 = arith.constant 0 : index
    %c40 = arith.constant 40 : index
    %c0_17 = arith.constant 0 : index
    %17 = vector.load %arg3[%c0_16, %c40, %c0_17] : memref<1x404x4xf32, #tpu.memory_space<vmem>>, vector<1x320x4xf32>
    %18 = vector.shape_cast %17 : vector<1x320x4xf32> to vector<320x4xf32>
    %c3 = arith.constant 3 : index
    %c0_18 = arith.constant 0 : index
    %c0_19 = arith.constant 0 : index
    %19 = vector.load %arg4[%c3, %c0_18, %c0_19] : memref<9x4x128xf32, #tpu.memory_space<vmem>>, vector<1x4x128xf32>
    %20 = vector.shape_cast %19 : vector<1x4x128xf32> to vector<4x128xf32>
    %cst_20 = arith.constant dense<0.000000e+00> : vector<320x128xf32>
    %21 = tpu.matmul %18, %20, %cst_20 {dimension_numbers = #tpu.dot_dimension_numbers<[1], [0], [0], [1], [0, 0, 1, 1], [], []>} : vector<320x4xf32>, vector<4x128xf32>, vector<320x128xf32> -> vector<320x128xf32>
    %22 = arith.addf %16, %21 : vector<320x128xf32>
    %c0_21 = arith.constant 0 : index
    %c42 = arith.constant 42 : index
    %c0_22 = arith.constant 0 : index
    %23 = vector.load %arg3[%c0_21, %c42, %c0_22] : memref<1x404x4xf32, #tpu.memory_space<vmem>>, vector<1x320x4xf32>
    %24 = vector.shape_cast %23 : vector<1x320x4xf32> to vector<320x4xf32>
    %c4_23 = arith.constant 4 : index
    %c0_24 = arith.constant 0 : index
    %c0_25 = arith.constant 0 : index
    %25 = vector.load %arg4[%c4_23, %c0_24, %c0_25] : memref<9x4x128xf32, #tpu.memory_space<vmem>>, vector<1x4x128xf32>
    %26 = vector.shape_cast %25 : vector<1x4x128xf32> to vector<4x128xf32>
    %cst_26 = arith.constant dense<0.000000e+00> : vector<320x128xf32>
    %27 = tpu.matmul %24, %26, %cst_26 {dimension_numbers = #tpu.dot_dimension_numbers<[1], [0], [0], [1], [0, 0, 1, 1], [], []>} : vector<320x4xf32>, vector<4x128xf32>, vector<320x128xf32> -> vector<320x128xf32>
    %28 = arith.addf %22, %27 : vector<320x128xf32>
    %c0_27 = arith.constant 0 : index
    %c44 = arith.constant 44 : index
    %c0_28 = arith.constant 0 : index
    %29 = vector.load %arg3[%c0_27, %c44, %c0_28] : memref<1x404x4xf32, #tpu.memory_space<vmem>>, vector<1x320x4xf32>
    %30 = vector.shape_cast %29 : vector<1x320x4xf32> to vector<320x4xf32>
    %c5 = arith.constant 5 : index
    %c0_29 = arith.constant 0 : index
    %c0_30 = arith.constant 0 : index
    %31 = vector.load %arg4[%c5, %c0_29, %c0_30] : memref<9x4x128xf32, #tpu.memory_space<vmem>>, vector<1x4x128xf32>
    %32 = vector.shape_cast %31 : vector<1x4x128xf32> to vector<4x128xf32>
    %cst_31 = arith.constant dense<0.000000e+00> : vector<320x128xf32>
    %33 = tpu.matmul %30, %32, %cst_31 {dimension_numbers = #tpu.dot_dimension_numbers<[1], [0], [0], [1], [0, 0, 1, 1], [], []>} : vector<320x4xf32>, vector<4x128xf32>, vector<320x128xf32> -> vector<320x128xf32>
    %34 = arith.addf %28, %33 : vector<320x128xf32>
    %c0_32 = arith.constant 0 : index
    %c80 = arith.constant 80 : index
    %c0_33 = arith.constant 0 : index
    %35 = vector.load %arg3[%c0_32, %c80, %c0_33] : memref<1x404x4xf32, #tpu.memory_space<vmem>>, vector<1x320x4xf32>
    %36 = vector.shape_cast %35 : vector<1x320x4xf32> to vector<320x4xf32>
    %c6 = arith.constant 6 : index
    %c0_34 = arith.constant 0 : index
    %c0_35 = arith.constant 0 : index
    %37 = vector.load %arg4[%c6, %c0_34, %c0_35] : memref<9x4x128xf32, #tpu.memory_space<vmem>>, vector<1x4x128xf32>
    %38 = vector.shape_cast %37 : vector<1x4x128xf32> to vector<4x128xf32>
    %cst_36 = arith.constant dense<0.000000e+00> : vector<320x128xf32>
    %39 = tpu.matmul %36, %38, %cst_36 {dimension_numbers = #tpu.dot_dimension_numbers<[1], [0], [0], [1], [0, 0, 1, 1], [], []>} : vector<320x4xf32>, vector<4x128xf32>, vector<320x128xf32> -> vector<320x128xf32>
    %40 = arith.addf %34, %39 : vector<320x128xf32>
    %c0_37 = arith.constant 0 : index
    %c82 = arith.constant 82 : index
    %c0_38 = arith.constant 0 : index
    %41 = vector.load %arg3[%c0_37, %c82, %c0_38] : memref<1x404x4xf32, #tpu.memory_space<vmem>>, vector<1x320x4xf32>
    %42 = vector.shape_cast %41 : vector<1x320x4xf32> to vector<320x4xf32>
    %c7 = arith.constant 7 : index
    %c0_39 = arith.constant 0 : index
    %c0_40 = arith.constant 0 : index
    %43 = vector.load %arg4[%c7, %c0_39, %c0_40] : memref<9x4x128xf32, #tpu.memory_space<vmem>>, vector<1x4x128xf32>
    %44 = vector.shape_cast %43 : vector<1x4x128xf32> to vector<4x128xf32>
    %cst_41 = arith.constant dense<0.000000e+00> : vector<320x128xf32>
    %45 = tpu.matmul %42, %44, %cst_41 {dimension_numbers = #tpu.dot_dimension_numbers<[1], [0], [0], [1], [0, 0, 1, 1], [], []>} : vector<320x4xf32>, vector<4x128xf32>, vector<320x128xf32> -> vector<320x128xf32>
    %46 = arith.addf %40, %45 : vector<320x128xf32>
    %c0_42 = arith.constant 0 : index
    %c84 = arith.constant 84 : index
    %c0_43 = arith.constant 0 : index
    %47 = vector.load %arg3[%c0_42, %c84, %c0_43] : memref<1x404x4xf32, #tpu.memory_space<vmem>>, vector<1x320x4xf32>
    %48 = vector.shape_cast %47 : vector<1x320x4xf32> to vector<320x4xf32>
    %c8 = arith.constant 8 : index
    %c0_44 = arith.constant 0 : index
    %c0_45 = arith.constant 0 : index
    %49 = vector.load %arg4[%c8, %c0_44, %c0_45] : memref<9x4x128xf32, #tpu.memory_space<vmem>>, vector<1x4x128xf32>
    %50 = vector.shape_cast %49 : vector<1x4x128xf32> to vector<4x128xf32>
    %cst_46 = arith.constant dense<0.000000e+00> : vector<320x128xf32>
    %51 = tpu.matmul %48, %50, %cst_46 {dimension_numbers = #tpu.dot_dimension_numbers<[1], [0], [0], [1], [0, 0, 1, 1], [], []>} : vector<320x4xf32>, vector<4x128xf32>, vector<320x128xf32> -> vector<320x128xf32>
    %52 = arith.addf %46, %51 : vector<320x128xf32>
    %cst_47 = arith.constant 0.000000e+00 : f32
    %53 = vector.broadcast %cst_47 : f32 to vector<320x128xf32>
    %54 = arith.maximumf %52, %53 : vector<320x128xf32>
    %c0_48 = arith.constant 0 : index
    %c0_49 = arith.constant 0 : index
    %c0_50 = arith.constant 0 : index
    %55 = vector.load %arg5[%c0_48, %c0_49, %c0_50] : memref<1x320x128xf32, #tpu.memory_space<vmem>>, vector<1x320x128xf32>
    %56 = vector.shape_cast %55 : vector<1x320x128xf32> to vector<320x128xf32>
    %57 = vector.shape_cast %54 : vector<320x128xf32> to vector<1x320x128xf32>
    tpu.vector_store %arg5[%c0_48, %c0_49, %c0_50], %57 {strides = array<i32>} : memref<1x320x128xf32, #tpu.memory_space<vmem>>, vector<1x320x128xf32>,
    return
  }
  func.func @transform_0(%arg0: i32, %arg1: i32, %arg2: i32) -> (i32, i32, i32) {
    %c0_i32 = arith.constant 0 : i32
    %c0_i32_0 = arith.constant 0 : i32
    return %arg0, %c0_i32, %arg2 : i32, i32, i32
  }
  func.func @transform_1(%arg0: i32, %arg1: i32, %arg2: i32) -> (i32, i32, i32) {
    %c0_i32 = arith.constant 0 : i32
    %c0_i32_0 = arith.constant 0 : i32
    return %c0_i32, %arg2, %arg1 : i32, i32, i32
  }
  func.func @transform_2(%arg0: i32, %arg1: i32, %arg2: i32) -> (i32, i32, i32) {
    %c0_i32 = arith.constant 0 : i32
    %c0_i32_0 = arith.constant 0 : i32
    return %arg0, %c0_i32, %arg1 : i32, i32, i32
  }
}

</mosaic_0001>

<bundles_post_ra>
// kernel: aspp_module_forward.1
= control target key start
LH: loop header
LB: loop body
LE: loop exit
PB: predicated region body
PF: predicated region fallthrough
CT: control target
= control target key end

     0   :  { %s3849_s9 = smov 0   ;;  %s3851_s10 = smov 0   ;;  %s5175_s0 = inlined_call_operand.vmem [shape: f32[2,404,4], index: 0, kind: input, shape index: {}]   ;;  %s5176_s1 = inlined_call_operand.vmem [shape: f32[9,4,128], index: 1, kind: input, shape index: {}]   ;;  %s5177_s2 = inlined_call_operand.vmem [shape: f32[2,320,128], index: 2, kind: output, shape index: {}]  }
   0x1   :  { %s3853_s11 = smov 0  }
   0x2 LB: > { %s31_s12 = sadd.s32 1, %s3828_s10  ;;  %p3399_p0 = scmp.ge.s32.totalorder %s3832_s11, 1  ;;  %s3832_s11 = sphi %s3853_s11, %s12_s11   ;;  %s3828_s10 = sphi %s3851_s10, %s5227_s10   ;;  %s3824_s9 = sphi %s3849_s9, %s5226_s9  }
   0x3   : > { %p33_p1 = scmp.ge.s32.totalorder %s31_s12, 2  ;;  %p152_p2 = scmp.lt.s32.totalorder %s3832_s11, 3 }
   0x5   : > { %s5229_s12 = smov (%p33_p1, %s31_s12), 0  ;;  %p153_p3 = pnand %p3399_p0, %p152_p2 }
   0x7   : > { %156 = sbr.rel (%p153_p3) target bundleno = 872 (0x368), region = 28 }
   0xc   : > { %v3402_v0 = vld [vmem:[%s5176_s1 + $0x4] sm:$0xf]  ;;  %vm414_vm0 = vcmask 1043456   ;;  %p187_p4 = scmp.lt.s32.totalorder %s3824_s9, 1  ;;  %v3485_v1 = vld [vmem:[%s5176_s1 + $0x8] sm:$0xf] }
   0xd   : > { %3781 = vmatpush.msk.msra.mxu1 %vm414_vm0, %v3402_v0  ;;  %3782 = vmatpush.msk.msra.mxu2 %vm414_vm0, %v3402_v0  ;;  %v3527_v2 = vld [vmem:[%s5176_s1 + $0xc] sm:$0xf]  ;;  %v250_v3 = vld [vmem:[%s5176_s1] sm:$0xf]  ;;  %v3569_v4 = vld [vmem:[%s5176_s1 + $0x10] sm:$0xf] }
   0xe   : > { %s5231_s9 = smov (!%p187_p4, %s3824_s9), 1  ;;  %3783 = vmatpush.msk.msra.mxu3 %vm414_vm0, %v3402_v0  ;;  %3403 = vmatpush.msk.msra.mxu0 %vm414_vm0, %v3402_v0  ;;  %vm293_vm1 = vcmask 31744   ;;  %v3653_v33 = vld [vmem:[%s5176_s1 + $0x18] sm:$0xf]  ;;  %v3695_v34 = vld [vmem:[%s5176_s1 + $0x1c] sm:$0xf] }
   0xf   : > { %3486 = vmatpush.msk.msrb.mxu2 %vm414_vm0, %v3485_v1  ;;  %3444 = vmatpush.msk.msrb.mxu1 %vm414_vm0, %v250_v3  ;;  %s3784_s23 = smul.u32 408, %s5231_s9  ;;  %v3611_v35 = vld [vmem:[%s5176_s1 + $0x14] sm:$0xf]  ;;  %v3737_v40 = vld [vmem:[%s5176_s1 + $0x20] sm:$0xf] }
  0x10   : > { %3528 = vmatpush.msk.msrb.mxu3 %vm414_vm0, %v3527_v2  ;;  %3570 = vmatpush.msk.msrb.mxu0 %vm414_vm0, %v3569_v4  ;;  %s3785_s7 = smul.u32 320, %s5231_s9 }
  0x11   : > { %s3896_s26 = scalar_lea.vmem %s5175_s0, %s3784_s23 }
  0x12   : > { %v3899_v5 = vld [vmem:[%s3896_s26 + $0x52] sm:$0xff]  ;;  %v3902_v6 = vld [vmem:[%s3896_s26 + $0xa2] sm:$0xff]  ;;  %v3916_v9 = vld [vmem:[%s3896_s26 + $0x5a] sm:$0xff]  ;;  %s4864_s14 = scalar_lea.vmem %s5177_s2, %s3785_s7 }
  0x13   : > { %v3905_v7 = vld [vmem:[%s3896_s26 + $0xf2] sm:$0xff]  ;;  %3414 = vmatmul.msk.f32.vlgmr.msra.gmra.mxu1 %vm293_vm1, %v3899_v5  ;;  %3424 = vmatmul.msk.f32.vlgmr.msra.gmra.mxu2 %vm293_vm1, %v3902_v6  ;;  %v251_v8 = vld [vmem:[%s3896_s26 + $0x2] sm:$0xff]  ;;  %v3919_v10 = vld [vmem:[%s3896_s26 + $0xaa] sm:$0xff] }
  0x14   : > { %3434 = vmatmul.msk.f32.vlgmr.msra.gmra.mxu3 %vm293_vm1, %v3905_v7  ;;  %3404 = vmatmul.msk.f32.vlgmr.msra.gmra.mxu0 %vm293_vm1, %v251_v8  ;;  %v3922_v11 = vld [vmem:[%s3896_s26 + $0xfa] sm:$0xff]  ;;  %v252_v12 = vld [vmem:[%s3896_s26 + $0xa] sm:$0xff]  ;;  %v3933_v13 = vld [vmem:[%s3896_s26 + $0x62] sm:$0xff] }
  0x15   : > { %v3936_v14 = vld [vmem:[%s3896_s26 + $0xb2] sm:$0xff]  ;;  %v3939_v15 = vld [vmem:[%s3896_s26 + $0x102] sm:$0xff]  ;;  %v3950_v17 = vld [vmem:[%s3896_s26 + $0x6a] sm:$0xff]  ;;  %3654 = vmatpush.msk.msra.mxu2 %vm414_vm0, %v3653_v33  ;;  %3696 = vmatpush.msk.msra.mxu3 %vm414_vm0, %v3695_v34 }
  0x16   : > { %v253_v16 = vld [vmem:[%s3896_s26 + $0x12] sm:$0xff]  ;;  %v3953_v18 = vld [vmem:[%s3896_s26 + $0xba] sm:$0xff]  ;;  %v3956_v19 = vld [vmem:[%s3896_s26 + $0x10a] sm:$0xff]  ;;  %3612 = vmatpush.msk.msra.mxu1 %vm414_vm0, %v3611_v35  ;;  %3738 = vmatpush.msk.msra.mxu0 %vm414_vm0, %v3737_v40 }
  0x17   : > { %v254_v20 = vld [vmem:[%s3896_s26 + $0x1a] sm:$0xff]  ;;  %v3967_v21 = vld [vmem:[%s3896_s26 + $0x72] sm:$0xff]  ;;  %v3970_v22 = vld [vmem:[%s3896_s26 + $0xc2] sm:$0xff] }
  0x18   : > { %v3973_v23 = vld [vmem:[%s3896_s26 + $0x112] sm:$0xff]  ;;  %v255_v24 = vld [vmem:[%s3896_s26 + $0x22] sm:$0xff]  ;;  %v3984_v25 = vld [vmem:[%s3896_s26 + $0x7a] sm:$0xff] }
  0x19   : > { %v3987_v26 = vld [vmem:[%s3896_s26 + $0xca] sm:$0xff]  ;;  %v3990_v27 = vld [vmem:[%s3896_s26 + $0x11a] sm:$0xff]  ;;  %v4001_v29 = vld [vmem:[%s3896_s26 + $0x82] sm:$0xff] }
  0x1a   : > { %v256_v28 = vld [vmem:[%s3896_s26 + $0x2a] sm:$0xff]  ;;  %v4004_v30 = vld [vmem:[%s3896_s26 + $0xd2] sm:$0xff]  ;;  %v4007_v31 = vld [vmem:[%s3896_s26 + $0x122] sm:$0xff] }
  0x1b   : > { %3415 = vmatmul.msk.f32.gmra.mxu1 %vm293_vm1, %v3916_v9  ;;  %3425 = vmatmul.msk.f32.gmra.mxu2 %vm293_vm1, %v3919_v10  ;;  %v257_v32 = vld [vmem:[%s3896_s26 + $0x32] sm:$0xff]  ;;  %v4030_v36 = vld [vmem:[%s3896_s26 + $0x8a] sm:$0xff]  ;;  %v4033_v37 = vld [vmem:[%s3896_s26 + $0xda] sm:$0xff] }
  0x1c   : > { %3435 = vmatmul.msk.f32.gmra.mxu3 %vm293_vm1, %v3922_v11  ;;  %3405 = vmatmul.msk.f32.gmra.mxu0 %vm293_vm1, %v252_v12  ;;  %v4036_v38 = vld [vmem:[%s3896_s26 + $0x12a] sm:$0xff]  ;;  %v258_v39 = vld [vmem:[%s3896_s26 + $0x3a] sm:$0xff]  ;;  %v4051_v41 = vld [vmem:[%s3896_s26 + $0x92] sm:$0xff] }
  0x1d   : > { %v4054_v42 = vld [vmem:[%s3896_s26 + $0xe2] sm:$0xff]  ;;  %v4057_v43 = vld [vmem:[%s3896_s26 + $0x132] sm:$0xff]  ;;  %v4068_v45 = vld [vmem:[%s3896_s26 + $0x9a] sm:$0xff] }
  0x1e   : > { %v259_v44 = vld [vmem:[%s3896_s26 + $0x42] sm:$0xff]  ;;  %v4071_v46 = vld [vmem:[%s3896_s26 + $0xea] sm:$0xff]  ;;  %v4074_v47 = vld [vmem:[%s3896_s26 + $0x13a] sm:$0xff] }
  0x1f   : > { %v260_v48 = vld [vmem:[%s3896_s26 + $0x4a] sm:$0xff]  ;;  %v210_v49 = vld [vmem:[%s3896_s26] sm:$0xff]  ;;  %v817_v56 = vld [vmem:[%s3896_s26 + $0x14] sm:$0xff] }
  0x20   : > { %v815_v50 = vld [vmem:[%s3896_s26 + $0x4] sm:$0xff]  ;;  %v816_v53 = vld [vmem:[%s3896_s26 + $0xc] sm:$0xff]  ;;  %v1159_v57 = vld [vmem:[%s3896_s26 + $0x38] sm:$0xff] }
  0x21   : > { %v1157_v51 = vld [vmem:[%s3896_s26 + $0x28] sm:$0xff]  ;;  %v1158_v54 = vld [vmem:[%s3896_s26 + $0x30] sm:$0xff]  ;;  %v213_v58 = vld [vmem:[%s3896_s26 + $0x18] sm:$0xff] }
  0x22   : > { %v211_v52 = vld [vmem:[%s3896_s26 + $0x8] sm:$0xff]  ;;  %v212_v55 = vld [vmem:[%s3896_s26 + $0x10] sm:$0xff]  ;;  %v818_v59 = vld [vmem:[%s3896_s26 + $0x1c] sm:$0xff] }
  0x23   : > { %3416 = vmatmul.msk.f32.gmra.mxu1 %vm293_vm1, %v3933_v13  ;;  %3426 = vmatmul.msk.f32.gmra.mxu2 %vm293_vm1, %v3936_v14  ;;  %v1160_v60 = vld [vmem:[%s3896_s26 + $0x40] sm:$0xff]  ;;  %v1161_v63 = vld [vmem:[%s3896_s26 + $0x48] sm:$0xff]  ;;  %v4123_v1 = vld [vmem:[%s3896_s26 + $0x50] sm:$0xff] }
  0x24   : > { %3436 = vmatmul.msk.f32.gmra.mxu3 %vm293_vm1, %v3939_v15  ;;  %3406 = vmatmul.msk.f32.gmra.mxu0 %vm293_vm1, %v253_v16  ;;  %v214_v61 = vld [vmem:[%s3896_s26 + $0x20] sm:$0xff]  ;;  %v4120_v0 = vld [vmem:[%s3896_s26 + $0x2c] sm:$0xff]  ;;  %v821_v3 = vld [vmem:[%s3896_s26 + $0x34] sm:$0xff] }
  0x25   : > { %v819_v62 = vld [vmem:[%s3896_s26 + $0x24] sm:$0xff]  ;;  %v1163_v4 = vld [vmem:[%s3896_s26 + $0x58] sm:$0xff] }
  0x26   : > { %v823_v34 = vld [vmem:[%s3896_s26 + $0x44] sm:$0xff] }
  0x27   : > { %v1165_v35 = vld [vmem:[%s3896_s26 + $0x68] sm:$0xff] }
  0x2b   : > { %3417 = vmatmul.msk.f32.gmra.mxu1 %vm293_vm1, %v3950_v17  ;;  %3427 = vmatmul.msk.f32.gmra.mxu2 %vm293_vm1, %v3953_v18 }
  0x2c   : > { %3437 = vmatmul.msk.f32.gmra.mxu3 %vm293_vm1, %v3956_v19  ;;  %3407 = vmatmul.msk.f32.gmra.mxu0 %vm293_vm1, %v254_v20  ;;  %v822_v20 = vld [vmem:[%s3896_s26 + $0x3c] sm:$0xff] }
  0x33   : > { %3418 = vmatmul.msk.f32.gmra.mxu1 %vm293_vm1, %v3967_v21  ;;  %3428 = vmatmul.msk.f32.gmra.mxu2 %vm293_vm1, %v3970_v22 }
  0x34   : > { %3438 = vmatmul.msk.f32.gmra.mxu3 %vm293_vm1, %v3973_v23  ;;  %3408 = vmatmul.msk.f32.gmra.mxu0 %vm293_vm1, %v255_v24  ;;  %v1164_v24 = vld [vmem:[%s3896_s26 + $0x60] sm:$0xff] }
  0x3b   : > { %3419 = vmatmul.msk.f32.gmra.mxu1 %vm293_vm1, %v3984_v25  ;;  %3429 = vmatmul.msk.f32.gmra.mxu2 %vm293_vm1, %v3987_v26 }
  0x3c   : > { %3439 = vmatmul.msk.f32.gmra.mxu3 %vm293_vm1, %v3990_v27  ;;  %3409 = vmatmul.msk.f32.gmra.mxu0 %vm293_vm1, %v256_v28 }
  0x43   : > { %3420 = vmatmul.msk.f32.gmra.mxu1 %vm293_vm1, %v4001_v29  ;;  %3430 = vmatmul.msk.f32.gmra.mxu2 %vm293_vm1, %v4004_v30 }
  0x44   : > { %3440 = vmatmul.msk.f32.gmra.mxu3 %vm293_vm1, %v4007_v31  ;;  %3410 = vmatmul.msk.f32.gmra.mxu0 %vm293_vm1, %v257_v32 }
  0x4b   : > { %3421 = vmatmul.msk.f32.gmra.mxu1 %vm293_vm1, %v4030_v36  ;;  %3431 = vmatmul.msk.f32.gmra.mxu2 %vm293_vm1, %v4033_v37 }
  0x4c   : > { %3441 = vmatmul.msk.f32.gmra.mxu3 %vm293_vm1, %v4036_v38  ;;  %3411 = vmatmul.msk.f32.gmra.mxu0 %vm293_vm1, %v258_v39 }
  0x53   : > { %3422 = vmatmul.msk.f32.gmra.mxu1 %vm293_vm1, %v4051_v41  ;;  %3432 = vmatmul.msk.f32.gmra.mxu2 %vm293_vm1, %v4054_v42 }
  0x54   : > { %3442 = vmatmul.msk.f32.gmra.mxu3 %vm293_vm1, %v4057_v43  ;;  %3412 = vmatmul.msk.f32.gmra.mxu0 %vm293_vm1, %v259_v44 }
  0x5b   : > { %3423 = vmatmul.msk.f32.gmra.mxu1 %vm293_vm1, %v4068_v45  ;;  %3433 = vmatmul.msk.f32.gmra.mxu2 %vm293_vm1, %v4071_v46 }
  0x5c   : > { %3443 = vmatmul.msk.f32.gmra.mxu3 %vm293_vm1, %v4074_v47  ;;  %3413 = vmatmul.msk.f32.gmra.mxu0 %vm293_vm1, %v260_v48 }
  0x63   : > { %3445 = vmatmul.msk.f32.vlgmr.msrb.gmra.mxu1 %vm293_vm1, %v210_v49  ;;  %3487 = vmatmul.msk.f32.vlgmr.msrb.gmra.mxu2 %vm293_vm1, %v815_v50  ;;  %v1166_v49 = vld [vmem:[%s3896_s26 + $0x70] sm:$0xff] }
  0x64   : > { %3529 = vmatmul.msk.f32.vlgmr.msrb.gmra.mxu3 %vm293_vm1, %v1157_v51  ;;  %3571 = vmatmul.msk.f32.vlgmr.msrb.gmra.mxu0 %vm293_vm1, %v256_v28 }
  0x6b   : > { %3446 = vmatmul.msk.f32.gmra.mxu1 %vm293_vm1, %v211_v52  ;;  %3488 = vmatmul.msk.f32.gmra.mxu2 %vm293_vm1, %v816_v53  ;;  %v4195_v53 = vld [vmem:[%s3896_s26 + $0x54] sm:$0xff] }
  0x6c   : > { %3530 = vmatmul.msk.f32.gmra.mxu3 %vm293_vm1, %v1158_v54  ;;  %3572 = vmatmul.msk.f32.gmra.mxu0 %vm293_vm1, %v257_v32 }
  0x73   : > { %3447 = vmatmul.msk.f32.gmra.mxu1 %vm293_vm1, %v212_v55  ;;  %3489 = vmatmul.msk.f32.gmra.mxu2 %vm293_vm1, %v817_v56 }
  0x74   : > { %3531 = vmatmul.msk.f32.gmra.mxu3 %vm293_vm1, %v1159_v57  ;;  %3573 = vmatmul.msk.f32.gmra.mxu0 %vm293_vm1, %v258_v39 }
  0x7b   : > { %3448 = vmatmul.msk.f32.gmra.mxu1 %vm293_vm1, %v213_v58  ;;  %3490 = vmatmul.msk.f32.gmra.mxu2 %vm293_vm1, %v818_v59  ;;  %v4214_v58 = vld [vmem:[%s3896_s26 + $0x5c] sm:$0xff] }
  0x7c   : > { %3532 = vmatmul.msk.f32.gmra.mxu3 %vm293_vm1, %v1160_v60  ;;  %3574 = vmatmul.msk.f32.gmra.mxu0 %vm293_vm1, %v259_v44  ;;  %5189 = vst [vmem:[#allocation7_spill] sm:$0xff] %v4214_v58  ;;  %v1168_v59 = vld [vmem:[%s3896_s26 + $0x80] sm:$0xff] }
  0x83   : > { %3449 = vmatmul.msk.f32.gmra.mxu1 %vm293_vm1, %v214_v61  ;;  %3491 = vmatmul.msk.f32.gmra.mxu2 %vm293_vm1, %v819_v62 }
  0x84   : > { %3533 = vmatmul.msk.f32.gmra.mxu3 %vm293_vm1, %v1161_v63  ;;  %3575 = vmatmul.msk.f32.gmra.mxu0 %vm293_vm1, %v260_v48  ;;  %v824_v48 = vld [vmem:[%s3896_s26 + $0x4c] sm:$0xff] }
  0x8b   : > { %3450 = vmatmul.msk.f32.gmra.mxu1 %vm293_vm1, %v1157_v51  ;;  %3492 = vmatmul.msk.f32.gmra.mxu2 %vm293_vm1, %v4120_v0 }
  0x8c   : > { %3534 = vmatmul.msk.f32.gmra.mxu3 %vm293_vm1, %v4123_v1  ;;  %3576 = vmatmul.msk.f32.gmra.mxu0 %vm293_vm1, %v3899_v5 }
  0x90   : > { %v4132_v2 = vpop.f32.mrf.mxu1 }
  0x91   : > { %v4136_v8 = vpop.f32.mrf.mxu0 }
  0x93   : > { %3451 = vmatmul.msk.f32.gmra.mxu1 %vm293_vm1, %v1158_v54  ;;  %3493 = vmatmul.msk.f32.gmra.mxu2 %vm293_vm1, %v821_v3  ;;  %v1167_v54 = vld [vmem:[%s3896_s26 + $0x78] sm:$0xff]  ;;  %v1169_v3 = vld [vmem:[%s3896_s26 + $0x88] sm:$0xff] }
  0x94   : > { %3535 = vmatmul.msk.f32.gmra.mxu3 %vm293_vm1, %v1163_v4  ;;  %3577 = vmatmul.msk.f32.gmra.mxu0 %vm293_vm1, %v3916_v9 }
  0x96   : > { %v4143_v12 = vpop.f32.mrf.mxu2 }
  0x97   : > { %v4145_v5 = vpop.f32.mrf.mxu3 }
  0x98   : > { %5184 = vst [vmem:[#allocation2_spill] sm:$0xff] %v4145_v5  ;;  %v4147_v16 = vpop.f32.mrf.mxu1  ;;  %v4289_v5 = vld [vmem:[%s3896_s26 + $0x7c] sm:$0xff] }
  0x99   : > { %v4151_v28 = vpop.f32.mrf.mxu0  ;;  %5201 = vst [vmem:[#allocation19_spill] sm:$0xff] %v4289_v5 }
  0x9b   : > { %3452 = vmatmul.msk.f32.gmra.mxu1 %vm293_vm1, %v1159_v57  ;;  %3494 = vmatmul.msk.f32.gmra.mxu2 %vm293_vm1, %v822_v20 }
  0x9c   : > { %3536 = vmatmul.msk.f32.gmra.mxu3 %vm293_vm1, %v1164_v24  ;;  %3578 = vmatmul.msk.f32.gmra.mxu0 %vm293_vm1, %v3933_v13 }
  0x9e   : > { %v4158_v9 = vpop.f32.mrf.mxu2 }
  0x9f   : > { %v4160_v32 = vpop.f32.mrf.mxu3 }
  0xa0   : > { %5185 = vst [vmem:[#allocation3_spill] sm:$0xff] %v4160_v32  ;;  %v4162_v33 = vpop.f32.mrf.mxu1 }
  0xa1   : > { %v4166_v39 = vpop.f32.mrf.mxu0 }
  0xa3   : > { %3453 = vmatmul.msk.f32.gmra.mxu1 %vm293_vm1, %v1160_v60  ;;  %3495 = vmatmul.msk.f32.gmra.mxu2 %vm293_vm1, %v823_v34 }
  0xa4   : > { %3537 = vmatmul.msk.f32.gmra.mxu3 %vm293_vm1, %v1165_v35  ;;  %3579 = vmatmul.msk.f32.gmra.mxu0 %vm293_vm1, %v3950_v17 }
  0xa6   : > { %v4173_v13 = vpop.f32.mrf.mxu2 }
  0xa7   : > { %v4175_v40 = vpop.f32.mrf.mxu3 }
  0xa8   : > { %5186 = vst [vmem:[#allocation4_spill] sm:$0xff] %v4175_v40  ;;  %v4177_v44 = vpop.f32.mrf.mxu1  ;;  %v4271_v40 = vld [vmem:[%s3896_s26 + $0x98] sm:$0xff] }
  0xa9   : > { %v4181_v50 = vpop.f32.mrf.mxu0 }
  0xab   : > { %3454 = vmatmul.msk.f32.gmra.mxu1 %vm293_vm1, %v1161_v63  ;;  %3496 = vmatmul.msk.f32.gmra.mxu2 %vm293_vm1, %v824_v48  ;;  %v4232_v63 = vld [vmem:[%s3896_s26 + $0x64] sm:$0xff]  ;;  %v4250_v48 = vld [vmem:[%s3896_s26 + $0x6c] sm:$0xff] }
  0xac   : > { %3538 = vmatmul.msk.f32.gmra.mxu3 %vm293_vm1, %v1166_v49  ;;  %3580 = vmatmul.msk.f32.gmra.mxu0 %vm293_vm1, %v3967_v21  ;;  %5192 = vst [vmem:[#allocation10_spill] sm:$0xff] %v4232_v63 }
  0xad   : > { %5195 = vst [vmem:[#allocation13_spill] sm:$0xff] %v4250_v48 }
  0xae   : > { %v4188_v17 = vpop.f32.mrf.mxu2 }
  0xaf   : > { %v4190_v51 = vpop.f32.mrf.mxu3 }
  0xb0   : > { %5187 = vst [vmem:[#allocation5_spill] sm:$0xff] %v4190_v51  ;;  %v4192_v52 = vpop.f32.mrf.mxu1  ;;  %v4268_v51 = vld [vmem:[%s3896_s26 + $0x74] sm:$0xff] }
  0xb1   : > { %v4198_v55 = vpop.f32.mrf.mxu0  ;;  %5198 = vst [vmem:[#allocation16_spill] sm:$0xff] %v4268_v51 }
  0xb3   : > { %3455 = vmatmul.msk.f32.gmra.mxu1 %vm293_vm1, %v4123_v1  ;;  %3497 = vmatmul.msk.f32.gmra.mxu2 %vm293_vm1, %v4195_v53 }
  0xb4   : > { %3539 = vmatmul.msk.f32.gmra.mxu3 %vm293_vm1, %v1167_v54  ;;  %3581 = vmatmul.msk.f32.gmra.mxu0 %vm293_vm1, %v3984_v25 }
  0xb6   : > { %v4207_v21 = vpop.f32.mrf.mxu2 }
  0xb7   : > { %v4209_v56 = vpop.f32.mrf.mxu3 }
  0xb8   : > { %5188 = vst [vmem:[#allocation6_spill] sm:$0xff] %v4209_v56  ;;  %v4211_v57 = vpop.f32.mrf.mxu1 }
  0xb9   : > { %v4217_v60 = vpop.f32.mrf.mxu0 }
  0xbb   : > { %3456 = vmatmul.msk.f32.gmra.mxu1 %vm293_vm1, %v1163_v4  ;;  %3498 = vmatmul.msk.f32.gmra.mxu2 %vm293_vm1, %v4214_v58 }
  0xbc   : > { %3540 = vmatmul.msk.f32.gmra.mxu3 %vm293_vm1, %v1168_v59  ;;  %3582 = vmatmul.msk.f32.gmra.mxu0 %vm293_vm1, %v4001_v29 }
  0xbe   : > { %v4225_v25 = vpop.f32.mrf.mxu2 }
  0xbf   : > { %5190 = vst [vmem:[#allocation8_spill] sm:$0xff] %v4225_v25  ;;  %v4227_v61 = vpop.f32.mrf.mxu3  ;;  %v4325_v25 = vld [vmem:[%s3896_s26 + $0xb0] sm:$0xff] }
  0xc0   : > { %5191 = vst [vmem:[#allocation9_spill] sm:$0xff] %v4227_v61  ;;  %v4229_v62 = vpop.f32.mrf.mxu1  ;;  %v1170_v61 = vld [vmem:[%s3896_s26 + $0x90] sm:$0xff] }
  0xc1   : > { %v4235_v4 = vpop.f32.mrf.mxu0 }
  0xc3   : > { %3457 = vmatmul.msk.f32.gmra.mxu1 %vm293_vm1, %v1164_v24  ;;  %3499 = vmatmul.msk.f32.gmra.mxu2 %vm293_vm1, %v4232_v63  ;;  %v4322_v63 = vld [vmem:[%s3896_s26 + $0x8c] sm:$0xff] }
  0xc4   : > { %3541 = vmatmul.msk.f32.gmra.mxu3 %vm293_vm1, %v1169_v3  ;;  %3583 = vmatmul.msk.f32.gmra.mxu0 %vm293_vm1, %v4030_v36 }
  0xc6   : > { %v4243_v29 = vpop.f32.mrf.mxu2 }
  0xc7   : > { %5193 = vst [vmem:[#allocation11_spill] sm:$0xff] %v4243_v29  ;;  %v4245_v20 = vpop.f32.mrf.mxu3 }
  0xc8   : > { %5194 = vst [vmem:[#allocation12_spill] sm:$0xff] %v4245_v20  ;;  %v4247_v34 = vpop.f32.mrf.mxu1 }
  0xc9   : > { %v4253_v24 = vpop.f32.mrf.mxu0 }
  0xcb   : > { %3458 = vmatmul.msk.f32.gmra.mxu1 %vm293_vm1, %v1165_v35  ;;  %3500 = vmatmul.msk.f32.gmra.mxu2 %vm293_vm1, %v4250_v48  ;;  %v4311_v48 = vld [vmem:[%s3896_s26 + $0xa8] sm:$0xff] }
  0xcc   : > { %3542 = vmatmul.msk.f32.gmra.mxu3 %vm293_vm1, %v1170_v61  ;;  %3584 = vmatmul.msk.f32.gmra.mxu0 %vm293_vm1, %v4051_v41 }
  0xce   : > { %v4261_v36 = vpop.f32.mrf.mxu2 }
  0xcf   : > { %5196 = vst [vmem:[#allocation14_spill] sm:$0xff] %v4261_v36  ;;  %v4263_v20 = vpop.f32.mrf.mxu3 }
  0xd0   : > { %5197 = vst [vmem:[#allocation15_spill] sm:$0xff] %v4263_v20  ;;  %v4265_v56 = vpop.f32.mrf.mxu1 }
  0xd1   : > { %v4273_v35 = vpop.f32.mrf.mxu0 }
  0xd3   : > { %3459 = vmatmul.msk.f32.gmra.mxu1 %vm293_vm1, %v1166_v49  ;;  %3501 = vmatmul.msk.f32.gmra.mxu2 %vm293_vm1, %v4268_v51  ;;  %v4292_v49 = vld [vmem:[%s3896_s26 + $0xa0] sm:$0xff] }
  0xd4   : > { %3543 = vmatmul.msk.f32.gmra.mxu3 %vm293_vm1, %v4271_v40  ;;  %3585 = vmatmul.msk.f32.gmra.mxu0 %vm293_vm1, %v4068_v45  ;;  %v4308_v51 = vld [vmem:[%s3896_s26 + $0x84] sm:$0xff] }
  0xd5   : > { %5204 = vst [vmem:[#allocation22_spill] sm:$0xff] %v4308_v51 }
  0xd6   : > { %v4282_v41 = vpop.f32.mrf.mxu2 }
  0xd7   : > { %5199 = vst [vmem:[#allocation17_spill] sm:$0xff] %v4282_v41  ;;  %v4284_v20 = vpop.f32.mrf.mxu3 }
  0xd8   : > { %5200 = vst [vmem:[#allocation18_spill] sm:$0xff] %v4284_v20  ;;  %v4286_v32 = vpop.f32.mrf.mxu1 }
  0xd9   : > { %v4294_v36 = vpop.f32.mrf.mxu0 }
  0xdb   : > { %3460 = vmatmul.msk.f32.gmra.mxu1 %vm293_vm1, %v1167_v54  ;;  %3502 = vmatmul.msk.f32.gmra.mxu2 %vm293_vm1, %v4289_v5 }
  0xdc   : > { %3544 = vmatmul.msk.f32.gmra.mxu3 %vm293_vm1, %v4292_v49  ;;  %3586 = vmatmul.msk.f32.gmra.mxu0 %vm293_vm1, %v3902_v6 }
  0xde   : > { %v4303_v45 = vpop.f32.mrf.mxu2 }
  0xdf   : > { %5202 = vst [vmem:[#allocation20_spill] sm:$0xff] %v4303_v45  ;;  %v4305_v20 = vpop.f32.mrf.mxu3 }
  0xe0   : > { %5203 = vst [vmem:[#allocation21_spill] sm:$0xff] %v4305_v20  ;;  %v695_v41 = vpop.f32.mrf.mxu1 }
  0xe1   : > { %v1681_v54 = vpop.f32.mrf.mxu0  ;;  %v696_v6 = vadd.f32 %v695_v41, %v4136_v8 }
  0xe3   : > { %3461 = vmatmul.msk.f32.gmra.mxu1 %vm293_vm1, %v1168_v59  ;;  %3503 = vmatmul.msk.f32.gmra.mxu2 %vm293_vm1, %v4308_v51 }
  0xe4   : > { %3545 = vmatmul.msk.f32.gmra.mxu3 %vm293_vm1, %v4311_v48  ;;  %3587 = vmatmul.msk.f32.gmra.mxu0 %vm293_vm1, %v3919_v10 }
  0xe6   : > { %v997_v20 = vpop.f32.mrf.mxu2 }
  0xe7   : > { %v1117_v45 = vadd.f32 %v997_v20, %v696_v6  ;;  %v1339_v5 = vpop.f32.mrf.mxu3 }
  0xe8   : > { %v698_v29 = vpop.f32.mrf.mxu1 }
  0xe9   : > { %v1459_v59 = vadd.f32 %v1339_v5, %v1117_v45  ;;  %v1684_v51 = vpop.f32.mrf.mxu0  ;;  %v699_v10 = vadd.f32 %v698_v29, %v4151_v28  ;;  %v4338_v45 = vld [vmem:[%s3896_s26 + $0x94] sm:$0xff] }
  0xeb   : > { %v4327_v58 = vadd.f32 %v1681_v54, %v1459_v59  ;;  %3462 = vmatmul.msk.f32.gmra.mxu1 %vm293_vm1, %v1169_v3  ;;  %3504 = vmatmul.msk.f32.gmra.mxu2 %vm293_vm1, %v4322_v63  ;;  %v4341_v54 = vld [vmem:[%s3896_s26 + $0xb8] sm:$0xff] }
  0xec   : > { %3546 = vmatmul.msk.f32.gmra.mxu3 %vm293_vm1, %v4325_v25  ;;  %3588 = vmatmul.msk.f32.gmra.mxu0 %vm293_vm1, %v3936_v14 }
  0xee   : > { %v1000_v8 = vpop.f32.mrf.mxu2 }
  0xef   : > { %v1118_v5 = vadd.f32 %v1000_v8, %v699_v10  ;;  %v1342_v20 = vpop.f32.mrf.mxu3 }
  0xf0   : > { %v701_v41 = vpop.f32.mrf.mxu1 }
  0xf1   : > { %v1460_v3 = vadd.f32 %v1342_v20, %v1118_v5  ;;  %v1687_v6 = vpop.f32.mrf.mxu0  ;;  %v702_v14 = vadd.f32 %v701_v41, %v4166_v39  ;;  %v4357_v5 = vld [vmem:[%s3896_s26 + $0xc0] sm:$0xff] }
  0xf3   : > { %v4343_v59 = vadd.f32 %v1684_v51, %v1460_v3  ;;  %3463 = vmatmul.msk.f32.gmra.mxu1 %vm293_vm1, %v1170_v61  ;;  %3505 = vmatmul.msk.f32.gmra.mxu2 %vm293_vm1, %v4338_v45  ;;  %v4354_v51 = vld [vmem:[%s3896_s26 + $0x9c] sm:$0xff] }
  0xf4   : > { %3547 = vmatmul.msk.f32.gmra.mxu3 %vm293_vm1, %v4341_v54  ;;  %3589 = vmatmul.msk.f32.gmra.mxu0 %vm293_vm1, %v3953_v18 }
  0xf6   : > { %v1003_v28 = vpop.f32.mrf.mxu2 }
  0xf7   : > { %v1119_v29 = vadd.f32 %v1003_v28, %v702_v14  ;;  %v1345_v10 = vpop.f32.mrf.mxu3  ;;  %v4371_v28 = vld [vmem:[%s3896_s26 + $0xa4] sm:$0xff] }
  0xf8   : > { %v704_v8 = vpop.f32.mrf.mxu1 }
  0xf9   : > { %v1461_v61 = vadd.f32 %v1345_v10, %v1119_v29  ;;  %v1690_v20 = vpop.f32.mrf.mxu0  ;;  %v705_v18 = vadd.f32 %v704_v8, %v4181_v50  ;;  %v4374_v29 = vld [vmem:[%s3896_s26 + $0xc8] sm:$0xff] }
  0xfb   : > { %v4359_v3 = vadd.f32 %v1687_v6, %v1461_v61  ;;  %3464 = vmatmul.msk.f32.gmra.mxu1 %vm293_vm1, %v4271_v40  ;;  %3506 = vmatmul.msk.f32.gmra.mxu2 %vm293_vm1, %v4354_v51 }
  0xfc   : > { %3548 = vmatmul.msk.f32.gmra.mxu3 %vm293_vm1, %v4357_v5  ;;  %3590 = vmatmul.msk.f32.gmra.mxu0 %vm293_vm1, %v3970_v22 }
  0xfe   : > { %v1006_v39 = vpop.f32.mrf.mxu2 }
  0xff   : > { %v1120_v41 = vadd.f32 %v1006_v39, %v705_v18  ;;  %v1348_v14 = vpop.f32.mrf.mxu3  ;;  %v4388_v39 = vld [vmem:[%s3896_s26 + $0xac] sm:$0xff] }
 0x100   : > { %v707_v6 = vpop.f32.mrf.mxu1 }
 0x101   : > { %v1462_v40 = vadd.f32 %v1348_v14, %v1120_v41  ;;  %v1693_v10 = vpop.f32.mrf.mxu0  ;;  %v708_v22 = vadd.f32 %v707_v6, %v4198_v55  ;;  %v4391_v41 = vld [vmem:[%s3896_s26 + $0xd0] sm:$0xff] }
 0x103   : > { %v4376_v61 = vadd.f32 %v1690_v20, %v1462_v40  ;;  %3465 = vmatmul.msk.f32.gmra.mxu1 %vm293_vm1, %v4292_v49  ;;  %3507 = vmatmul.msk.f32.gmra.mxu2 %vm293_vm1, %v4371_v28 }
 0x104   : > { %3549 = vmatmul.msk.f32.gmra.mxu3 %vm293_vm1, %v4374_v29  ;;  %3591 = vmatmul.msk.f32.gmra.mxu0 %vm293_vm1, %v3987_v26 }
 0x106   : > { %v1009_v50 = vpop.f32.mrf.mxu2 }
 0x107   : > { %v1121_v8 = vadd.f32 %v1009_v50, %v708_v22  ;;  %v1351_v18 = vpop.f32.mrf.mxu3  ;;  %v4405_v50 = vld [vmem:[%s3896_s26 + $0xb4] sm:$0xff] }
 0x108   : > { %v710_v20 = vpop.f32.mrf.mxu1 }
 0x109   : > { %v1463_v49 = vadd.f32 %v1351_v18, %v1121_v8  ;;  %v1696_v14 = vpop.f32.mrf.mxu0  ;;  %v711_v26 = vadd.f32 %v710_v20, %v4217_v60  ;;  %v4408_v8 = vld [vmem:[%s3896_s26 + $0xd8] sm:$0xff] }
 0x10b   : > { %v4393_v40 = vadd.f32 %v1693_v10, %v1463_v49  ;;  %3466 = vmatmul.msk.f32.gmra.mxu1 %vm293_vm1, %v4311_v48  ;;  %3508 = vmatmul.msk.f32.gmra.mxu2 %vm293_vm1, %v4388_v39 }
 0x10c   : > { %3550 = vmatmul.msk.f32.gmra.mxu3 %vm293_vm1, %v4391_v41  ;;  %3592 = vmatmul.msk.f32.gmra.mxu0 %vm293_vm1, %v4004_v30 }
 0x10e   : > { %v1012_v55 = vpop.f32.mrf.mxu2 }
 0x10f   : > { %v1122_v6 = vadd.f32 %v1012_v55, %v711_v26  ;;  %v1354_v22 = vpop.f32.mrf.mxu3  ;;  %v4422_v55 = vld [vmem:[%s3896_s26 + $0xbc] sm:$0xff] }
 0x110   : > { %v713_v10 = vpop.f32.mrf.mxu1 }
 0x111   : > { %v1464_v48 = vadd.f32 %v1354_v22, %v1122_v6  ;;  %v1699_v18 = vpop.f32.mrf.mxu0  ;;  %v714_v30 = vadd.f32 %v713_v10, %v4235_v4  ;;  %v4425_v6 = vld [vmem:[%s3896_s26 + $0xe0] sm:$0xff] }
 0x113   : > { %v4410_v49 = vadd.f32 %v1696_v14, %v1464_v48  ;;  %3467 = vmatmul.msk.f32.gmra.mxu1 %vm293_vm1, %v4325_v25  ;;  %3509 = vmatmul.msk.f32.gmra.mxu2 %vm293_vm1, %v4405_v50 }
 0x114   : > { %3551 = vmatmul.msk.f32.gmra.mxu3 %vm293_vm1, %v4408_v8  ;;  %3593 = vmatmul.msk.f32.gmra.mxu0 %vm293_vm1, %v4033_v37 }
 0x116   : > { %v1015_v60 = vpop.f32.mrf.mxu2 }
 0x117   : > { %v1123_v20 = vadd.f32 %v1015_v60, %v714_v30  ;;  %v1357_v26 = vpop.f32.mrf.mxu3  ;;  %v4439_v60 = vld [vmem:[%s3896_s26 + $0xc4] sm:$0xff] }
 0x118   : > { %v716_v14 = vpop.f32.mrf.mxu1 }
 0x119   : > { %v1465_v25 = vadd.f32 %v1357_v26, %v1123_v20  ;;  %v1702_v22 = vpop.f32.mrf.mxu0  ;;  %v717_v37 = vadd.f32 %v716_v14, %v4253_v24  ;;  %v4442_v20 = vld [vmem:[%s3896_s26 + $0xe8] sm:$0xff] }
 0x11b   : > { %v4427_v48 = vadd.f32 %v1699_v18, %v1465_v25  ;;  %3468 = vmatmul.msk.f32.gmra.mxu1 %vm293_vm1, %v4341_v54  ;;  %3510 = vmatmul.msk.f32.gmra.mxu2 %vm293_vm1, %v4422_v55 }
 0x11c   : > { %3552 = vmatmul.msk.f32.gmra.mxu3 %vm293_vm1, %v4425_v6  ;;  %3594 = vmatmul.msk.f32.gmra.mxu0 %vm293_vm1, %v4054_v42 }
 0x11e   : > { %v1018_v4 = vpop.f32.mrf.mxu2 }
 0x11f   : > { %v1124_v10 = vadd.f32 %v1018_v4, %v717_v37  ;;  %v1360_v30 = vpop.f32.mrf.mxu3  ;;  %v4456_v4 = vld [vmem:[%s3896_s26 + $0xcc] sm:$0xff] }
 0x120   : > { %v719_v18 = vpop.f32.mrf.mxu1 }
 0x121   : > { %v1466_v54 = vadd.f32 %v1360_v30, %v1124_v10  ;;  %v1705_v26 = vpop.f32.mrf.mxu0  ;;  %v720_v42 = vadd.f32 %v719_v18, %v4273_v35  ;;  %v4459_v10 = vld [vmem:[%s3896_s26 + $0xf0] sm:$0xff] }
 0x123   : > { %v4444_v25 = vadd.f32 %v1702_v22, %v1466_v54  ;;  %3469 = vmatmul.msk.f32.gmra.mxu1 %vm293_vm1, %v4357_v5  ;;  %3511 = vmatmul.msk.f32.gmra.mxu2 %vm293_vm1, %v4439_v60 }
 0x124   : > { %3553 = vmatmul.msk.f32.gmra.mxu3 %vm293_vm1, %v4442_v20  ;;  %3595 = vmatmul.msk.f32.gmra.mxu0 %vm293_vm1, %v4071_v46 }
 0x126   : > { %v1021_v24 = vpop.f32.mrf.mxu2 }
 0x127   : > { %v1125_v14 = vadd.f32 %v1021_v24, %v720_v42  ;;  %v1363_v37 = vpop.f32.mrf.mxu3  ;;  %v4473_v24 = vld [vmem:[%s3896_s26 + $0xd4] sm:$0xff] }
 0x128   : > { %v722_v22 = vpop.f32.mrf.mxu1 }
 0x129   : > { %v1467_v5 = vadd.f32 %v1363_v37, %v1125_v14  ;;  %v1708_v30 = vpop.f32.mrf.mxu0  ;;  %v723_v46 = vadd.f32 %v722_v22, %v4294_v36  ;;  %v4476_v14 = vld [vmem:[%s3896_s26 + $0xf8] sm:$0xff] }
 0x12b   : > { %v4461_v54 = vadd.f32 %v1705_v26, %v1467_v5  ;;  %3470 = vmatmul.msk.f32.gmra.mxu1 %vm293_vm1, %v4374_v29  ;;  %3512 = vmatmul.msk.f32.gmra.mxu2 %vm293_vm1, %v4456_v4 }
 0x12c   : > { %3554 = vmatmul.msk.f32.gmra.mxu3 %vm293_vm1, %v4459_v10  ;;  %3596 = vmatmul.msk.f32.gmra.mxu0 %vm293_vm1, %v3905_v7 }
 0x12e   : > { %v1024_v35 = vpop.f32.mrf.mxu2 }
 0x12f   : > { %v1126_v18 = vadd.f32 %v1024_v35, %v723_v46  ;;  %v1366_v42 = vpop.f32.mrf.mxu3  ;;  %v4490_v35 = vld [vmem:[%s3896_s26 + $0xdc] sm:$0xff] }
 0x130   : > { %v725_v26 = vpop.f32.mrf.mxu1 }
 0x131   : > { %v1468_v29 = vadd.f32 %v1366_v42, %v1126_v18  ;;  %v1711_v37 = vpop.f32.mrf.mxu0  ;;  %v726_v7 = vadd.f32 %v725_v26, %v4132_v2  ;;  %v4493_v18 = vld [vmem:[%s3896_s26 + $0x100] sm:$0xff] }
 0x133   : > { %v4478_v5 = vadd.f32 %v1708_v30, %v1468_v29  ;;  %3471 = vmatmul.msk.f32.gmra.mxu1 %vm293_vm1, %v4391_v41  ;;  %3513 = vmatmul.msk.f32.gmra.mxu2 %vm293_vm1, %v4473_v24 }
 0x134   : > { %3555 = vmatmul.msk.f32.gmra.mxu3 %vm293_vm1, %v4476_v14  ;;  %3597 = vmatmul.msk.f32.gmra.mxu0 %vm293_vm1, %v3922_v11 }
 0x136   : > { %v1027_v36 = vpop.f32.mrf.mxu2 }
 0x137   : > { %v1127_v22 = vadd.f32 %v1027_v36, %v726_v7  ;;  %v1369_v46 = vpop.f32.mrf.mxu3  ;;  %v4507_v36 = vld [vmem:[%s3896_s26 + $0xe4] sm:$0xff] }
 0x138   : > { %v728_v30 = vpop.f32.mrf.mxu1 }
 0x139   : > { %v1469_v41 = vadd.f32 %v1369_v46, %v1127_v22  ;;  %v1714_v42 = vpop.f32.mrf.mxu0  ;;  %v729_v11 = vadd.f32 %v728_v30, %v4147_v16  ;;  %v4510_v22 = vld [vmem:[%s3896_s26 + $0x108] sm:$0xff] }
 0x13b   : > { %v4495_v29 = vadd.f32 %v1711_v37, %v1469_v41  ;;  %3472 = vmatmul.msk.f32.gmra.mxu1 %vm293_vm1, %v4408_v8  ;;  %3514 = vmatmul.msk.f32.gmra.mxu2 %vm293_vm1, %v4490_v35 }
 0x13c   : > { %3556 = vmatmul.msk.f32.gmra.mxu3 %vm293_vm1, %v4493_v18  ;;  %3598 = vmatmul.msk.f32.gmra.mxu0 %vm293_vm1, %v3939_v15 }
 0x13e   : > { %v1030_v2 = vpop.f32.mrf.mxu2 }
 0x13f   : > { %v1128_v26 = vadd.f32 %v1030_v2, %v729_v11  ;;  %v1372_v7 = vpop.f32.mrf.mxu3  ;;  %v4524_v2 = vld [vmem:[%s3896_s26 + $0xec] sm:$0xff] }
 0x140   : > { %v731_v37 = vpop.f32.mrf.mxu1 }
 0x141   : > { %v1470_v8 = vadd.f32 %v1372_v7, %v1128_v26  ;;  %v1717_v46 = vpop.f32.mrf.mxu0  ;;  %v732_v15 = vadd.f32 %v731_v37, %v4162_v33  ;;  %v4527_v26 = vld [vmem:[%s3896_s26 + $0x110] sm:$0xff] }
 0x143   : > { %v4512_v41 = vadd.f32 %v1714_v42, %v1470_v8  ;;  %3473 = vmatmul.msk.f32.gmra.mxu1 %vm293_vm1, %v4425_v6  ;;  %3515 = vmatmul.msk.f32.gmra.mxu2 %vm293_vm1, %v4507_v36 }
 0x144   : > { %3557 = vmatmul.msk.f32.gmra.mxu3 %vm293_vm1, %v4510_v22  ;;  %3599 = vmatmul.msk.f32.gmra.mxu0 %vm293_vm1, %v3956_v19 }
 0x146   : > { %v1033_v16 = vpop.f32.mrf.mxu2 }
 0x147   : > { %v1129_v30 = vadd.f32 %v1033_v16, %v732_v15  ;;  %v1375_v11 = vpop.f32.mrf.mxu3  ;;  %v4541_v16 = vld [vmem:[%s3896_s26 + $0xf4] sm:$0xff] }
 0x148   : > { %v734_v42 = vpop.f32.mrf.mxu1 }
 0x149   : > { %v1471_v6 = vadd.f32 %v1375_v11, %v1129_v30  ;;  %v1720_v7 = vpop.f32.mrf.mxu0  ;;  %v735_v19 = vadd.f32 %v734_v42, %v4177_v44  ;;  %v4544_v30 = vld [vmem:[%s3896_s26 + $0x118] sm:$0xff] }
 0x14b   : > { %v4529_v8 = vadd.f32 %v1717_v46, %v1471_v6  ;;  %3474 = vmatmul.msk.f32.gmra.mxu1 %vm293_vm1, %v4442_v20  ;;  %3516 = vmatmul.msk.f32.gmra.mxu2 %vm293_vm1, %v4524_v2 }
 0x14c   : > { %3558 = vmatmul.msk.f32.gmra.mxu3 %vm293_vm1, %v4527_v26  ;;  %3600 = vmatmul.msk.f32.gmra.mxu0 %vm293_vm1, %v3973_v23 }
 0x14e   : > { %v1036_v33 = vpop.f32.mrf.mxu2 }
 0x14f   : > { %v1130_v37 = vadd.f32 %v1036_v33, %v735_v19  ;;  %v1378_v15 = vpop.f32.mrf.mxu3  ;;  %v846_v33 = vld [vmem:[%s3896_s26 + $0xfc] sm:$0xff] }
 0x150   : > { %v737_v46 = vpop.f32.mrf.mxu1 }
 0x151   : > { %v1472_v20 = vadd.f32 %v1378_v15, %v1130_v37  ;;  %v1723_v11 = vpop.f32.mrf.mxu0  ;;  %v738_v23 = vadd.f32 %v737_v46, %v4192_v52 }
 0x153   : > { %v4546_v6 = vadd.f32 %v1720_v7, %v1472_v20  ;;  %3475 = vmatmul.msk.f32.gmra.mxu1 %vm293_vm1, %v4459_v10  ;;  %3517 = vmatmul.msk.f32.gmra.mxu2 %vm293_vm1, %v4541_v16  ;;  %v4559_v10 = vld [vmem:[%s3896_s26 + $0x120] sm:$0xff] }
 0x154   : > { %3559 = vmatmul.msk.f32.gmra.mxu3 %vm293_vm1, %v4544_v30  ;;  %3601 = vmatmul.msk.f32.gmra.mxu0 %vm293_vm1, %v3990_v27 }
 0x156   : > { %v1039_v44 = vpop.f32.mrf.mxu2 }
 0x157   : > { %v1131_v42 = vadd.f32 %v1039_v44, %v738_v23  ;;  %v1381_v19 = vpop.f32.mrf.mxu3 }
 0x158   : > { %v740_v7 = vpop.f32.mrf.mxu1 }
 0x159   : > { %v1473_v37 = vadd.f32 %v1381_v19, %v1131_v42  ;;  %v1726_v15 = vpop.f32.mrf.mxu0  ;;  %v741_v27 = vadd.f32 %v740_v7, %v4211_v57  ;;  %v4573_v19 = vld [vmem:[%s3896_s26 + $0x128] sm:$0xff] }
 0x15b   : > { %v4561_v20 = vadd.f32 %v1723_v11, %v1473_v37  ;;  %3476 = vmatmul.msk.f32.gmra.mxu1 %vm293_vm1, %v4476_v14  ;;  %3518 = vmatmul.msk.f32.gmra.mxu2 %vm293_vm1, %v846_v33  ;;  %v847_v11 = vld [vmem:[%s3896_s26 + $0x104] sm:$0xff] }
 0x15c   : > { %3560 = vmatmul.msk.f32.gmra.mxu3 %vm293_vm1, %v4559_v10  ;;  %3602 = vmatmul.msk.f32.gmra.mxu0 %vm293_vm1, %v4007_v31 }
 0x15e   : > { %v1042_v52 = vpop.f32.mrf.mxu2 }
 0x15f   : > { %v1132_v46 = vadd.f32 %v1042_v52, %v741_v27  ;;  %v1384_v23 = vpop.f32.mrf.mxu3 }
 0x160   : > { %v743_v44 = vpop.f32.mrf.mxu1 }
 0x161   : > { %v1474_v42 = vadd.f32 %v1384_v23, %v1132_v46  ;;  %v1729_v14 = vpop.f32.mrf.mxu0  ;;  %v744_v31 = vadd.f32 %v743_v44, %v4229_v62  ;;  %v4587_v46 = vld [vmem:[%s3896_s26 + $0x130] sm:$0xff] }
 0x163   : > { %v4575_v33 = vadd.f32 %v1726_v15, %v1474_v42  ;;  %3477 = vmatmul.msk.f32.gmra.mxu1 %vm293_vm1, %v4493_v18  ;;  %3519 = vmatmul.msk.f32.gmra.mxu2 %vm293_vm1, %v847_v11  ;;  %v848_v15 = vld [vmem:[%s3896_s26 + $0x10c] sm:$0xff] }
 0x164   : > { %3561 = vmatmul.msk.f32.gmra.mxu3 %vm293_vm1, %v4573_v19  ;;  %3603 = vmatmul.msk.f32.gmra.mxu0 %vm293_vm1, %v4036_v38 }
 0x166   : > { %v1045_v57 = vpop.f32.mrf.mxu2 }
 0x167   : > { %v1133_v7 = vadd.f32 %v1045_v57, %v744_v31  ;;  %v1387_v37 = vpop.f32.mrf.mxu3  ;;  %v4601_v57 = vld [vmem:[%s3896_s26 + $0x138] sm:$0xff] }
 0x168   : > { %v746_v27 = vpop.f32.mrf.mxu1 }
 0x169   : > { %v1475_v52 = vadd.f32 %v1387_v37, %v1133_v7  ;;  %v1732_v18 = vpop.f32.mrf.mxu0  ;;  %v747_v38 = vadd.f32 %v746_v27, %v4247_v34 }
 0x16b   : > { %v4589_v23 = vadd.f32 %v1729_v14, %v1475_v52  ;;  %3478 = vmatmul.msk.f32.gmra.mxu1 %vm293_vm1, %v4510_v22  ;;  %3520 = vmatmul.msk.f32.gmra.mxu2 %vm293_vm1, %v848_v15  ;;  %v849_v14 = vld [vmem:[%s3896_s26 + $0x114] sm:$0xff]  ;;  %v850_v52 = vld [vmem:[%s3896_s26 + $0x11c] sm:$0xff] }
 0x16c   : > { %3562 = vmatmul.msk.f32.gmra.mxu3 %vm293_vm1, %v4587_v46  ;;  %3604 = vmatmul.msk.f32.gmra.mxu0 %vm293_vm1, %v4057_v43 }
 0x16e   : > { %v1048_v62 = vpop.f32.mrf.mxu2 }
 0x16f   : > { %v1134_v44 = vadd.f32 %v1048_v62, %v747_v38  ;;  %v1390_v11 = vpop.f32.mrf.mxu3  ;;  %v1192_v38 = vld [vmem:[%s3896_s26 + $0x140] sm:$0xff] }
 0x170   : > { %v749_v42 = vpop.f32.mrf.mxu1  ;;  %v1534_v62 = vld [vmem:[%s3896_s26 + $0x142] sm:$0xff] }
 0x171   : > { %v1476_v31 = vadd.f32 %v1390_v11, %v1134_v44  ;;  %v1735_v22 = vpop.f32.mrf.mxu0  ;;  %v750_v43 = vadd.f32 %v749_v42, %v4265_v56 }
 0x173   : > { %v4603_v7 = vadd.f32 %v1732_v18, %v1476_v31  ;;  %3479 = vmatmul.msk.f32.gmra.mxu1 %vm293_vm1, %v4527_v26  ;;  %3521 = vmatmul.msk.f32.gmra.mxu2 %vm293_vm1, %v849_v14  ;;  %v851_v31 = vld [vmem:[%s3896_s26 + $0x124] sm:$0xff] }
 0x174   : > { %3563 = vmatmul.msk.f32.gmra.mxu3 %vm293_vm1, %v4601_v57  ;;  %3605 = vmatmul.msk.f32.gmra.mxu0 %vm293_vm1, %v4074_v47 }
 0x176   : > { %v1051_v34 = vpop.f32.mrf.mxu2 }
 0x177   : > { %v1135_v37 = vadd.f32 %v1051_v34, %v750_v43  ;;  %v1393_v27 = vpop.f32.mrf.mxu3 }
 0x178   : > { %v752_v15 = vpop.f32.mrf.mxu1 }
 0x179   : > { %v1477_v18 = vadd.f32 %v1393_v27, %v1135_v37  ;;  %v1738_v26 = vpop.f32.mrf.mxu0  ;;  %v753_v47 = vadd.f32 %v752_v15, %v4286_v32 }
 0x17b   : > { %v4616_v44 = vadd.f32 %v1735_v22, %v1477_v18  ;;  %3480 = vmatmul.msk.f32.gmra.mxu1 %vm293_vm1, %v4544_v30  ;;  %3522 = vmatmul.msk.f32.gmra.mxu2 %vm293_vm1, %v850_v52  ;;  %v1193_v22 = vld [vmem:[%s3896_s26 + $0x148] sm:$0xff] }
 0x17c   : > { %3564 = vmatmul.msk.f32.gmra.mxu3 %vm293_vm1, %v1192_v38  ;;  %3606 = vmatmul.msk.f32.gmra.mxu0 %vm293_vm1, %v1534_v62  ;;  %v1535_v30 = vld [vmem:[%s3896_s26 + $0x14a] sm:$0xff] }
 0x17d   : > { %v852_v38 = vld [vmem:[%s3896_s26 + $0x12c] sm:$0xff] }
 0x17e   : > { %v1054_v56 = vpop.f32.mrf.mxu2 }
 0x17f   : > { %v1136_v11 = vadd.f32 %v1054_v56, %v753_v47  ;;  %v1396_v42 = vpop.f32.mrf.mxu3 }
 0x180   : > { %v755_v14 = vpop.f32.mrf.mxu1 }
 0x181   : > { %v1478_v43 = vadd.f32 %v1396_v42, %v1136_v11  ;;  %v1741_v34 = vpop.f32.mrf.mxu0  ;;  %v756_v32 = vadd.f32 %v755_v14, %v4143_v12 }
 0x183   : > { %v4627_v37 = vadd.f32 %v1738_v26, %v1478_v43  ;;  %3481 = vmatmul.msk.f32.gmra.mxu1 %vm293_vm1, %v4559_v10  ;;  %3523 = vmatmul.msk.f32.gmra.mxu2 %vm293_vm1, %v851_v31  ;;  %v1194_v26 = vld [vmem:[%s3896_s26 + $0x150] sm:$0xff] }
 0x184   : > { %3565 = vmatmul.msk.f32.gmra.mxu3 %vm293_vm1, %v1193_v22  ;;  %3607 = vmatmul.msk.f32.gmra.mxu0 %vm293_vm1, %v1535_v30  ;;  %v1536_v10 = vld [vmem:[%s3896_s26 + $0x152] sm:$0xff] }
 0x185   : > { %v853_v43 = vld [vmem:[%s3896_s26 + $0x134] sm:$0xff] }
 0x186   : > { %v1057_v27 = vpop.f32.mrf.mxu2 }
 0x187   : > { %v1137_v15 = vadd.f32 %v1057_v27, %v756_v32  ;;  %v1399_v52 = vpop.f32.mrf.mxu3 }
 0x188   : > { %v758_v18 = vpop.f32.mrf.mxu1 }
 0x189   : > { %v1479_v62 = vadd.f32 %v1399_v52, %v1137_v15  ;;  %v1744_v47 = vpop.f32.mrf.mxu0  ;;  %v759_v12 = vadd.f32 %v758_v18, %v4158_v9 }
 0x18b   : > { %v4638_v56 = vadd.f32 %v1741_v34, %v1479_v62  ;;  %3482 = vmatmul.msk.f32.gmra.mxu1 %vm293_vm1, %v4573_v19  ;;  %3524 = vmatmul.msk.f32.gmra.mxu2 %vm293_vm1, %v852_v38  ;;  %v1195_v34 = vld [vmem:[%s3896_s26 + $0x158] sm:$0xff] }
 0x18c   : > { %3566 = vmatmul.msk.f32.gmra.mxu3 %vm293_vm1, %v1194_v26  ;;  %3608 = vmatmul.msk.f32.gmra.mxu0 %vm293_vm1, %v1536_v10  ;;  %v1537_v19 = vld [vmem:[%s3896_s26 + $0x15a] sm:$0xff]  ;;  %v1538_v10 = vld [vmem:[%s3896_s26 + $0x162] sm:$0xff] }
 0x18d   : > { %v854_v38 = vld [vmem:[%s3896_s26 + $0x13c] sm:$0xff] }
 0x18e   : > { %v1060_v11 = vpop.f32.mrf.mxu2  ;;  %v1196_v26 = vld [vmem:[%s3896_s26 + $0x160] sm:$0xff] }
 0x18f   : > { %v1138_v42 = vadd.f32 %v1060_v11, %v759_v12  ;;  %v1402_v14 = vpop.f32.mrf.mxu3 }
 0x190   : > { %v761_v31 = vpop.f32.mrf.mxu1 }
 0x191   : > { %v1480_v22 = vadd.f32 %v1402_v14, %v1138_v42  ;;  %v1747_v30 = vpop.f32.mrf.mxu0  ;;  %v762_v9 = vadd.f32 %v761_v31, %v4173_v13 }
 0x193   : > { %v4649_v32 = vadd.f32 %v1744_v47, %v1480_v22  ;;  %3483 = vmatmul.msk.f32.gmra.mxu1 %vm293_vm1, %v4587_v46  ;;  %3525 = vmatmul.msk.f32.gmra.mxu2 %vm293_vm1, %v853_v43  ;;  %v2525_v43 = vld [vmem:[%s3896_s26 + $0x52] sm:$0xff] }
 0x194   : > { %3567 = vmatmul.msk.f32.gmra.mxu3 %vm293_vm1, %v1195_v34  ;;  %3609 = vmatmul.msk.f32.gmra.mxu0 %vm293_vm1, %v1537_v19 }
 0x196   : > { %v1063_v27 = vpop.f32.mrf.mxu2 }
 0x197   : > { %v1139_v15 = vadd.f32 %v1063_v27, %v762_v9  ;;  %v1405_v52 = vpop.f32.mrf.mxu3  ;;  %v1842_v27 = vld [vmem:[%s3896_s26 + $0x34] sm:$0xff] }
 0x198   : > { %v764_v18 = vpop.f32.mrf.mxu1 }
 0x199   : > { %v1481_v62 = vadd.f32 %v1405_v52, %v1139_v15  ;;  %v1750_v47 = vpop.f32.mrf.mxu0  ;;  %v765_v13 = vadd.f32 %v764_v18, %v4188_v17  ;;  %v2184_v15 = vld [vmem:[%s3896_s26 + $0x58] sm:$0xff] }
 0x19b   : > { %v4660_v12 = vadd.f32 %v1747_v30, %v1481_v62  ;;  %3484 = vmatmul.msk.f32.gmra.mxu1 %vm293_vm1, %v4601_v57  ;;  %3526 = vmatmul.msk.f32.gmra.mxu2 %vm293_vm1, %v854_v38 }
 0x19c   : > { %3568 = vmatmul.msk.f32.gmra.mxu3 %vm293_vm1, %v1196_v26  ;;  %3610 = vmatmul.msk.f32.gmra.mxu0 %vm293_vm1, %v1538_v10 }
 0x19e   : > { %v1066_v46 = vpop.f32.mrf.mxu2 }
 0x19f   : > { %v1140_v11 = vadd.f32 %v1066_v46, %v765_v13  ;;  %v1408_v42 = vpop.f32.mrf.mxu3  ;;  %v1843_v13 = vld [vmem:[%s3896_s26 + $0x3c] sm:$0xff] }
 0x1a0   : > { %v767_v14 = vpop.f32.mrf.mxu1  ;;  %v2185_v46 = vld [vmem:[%s3896_s26 + $0x60] sm:$0xff] }
 0x1a1   : > { %v1482_v31 = vadd.f32 %v1408_v42, %v1140_v11  ;;  %v1753_v22 = vpop.f32.mrf.mxu0  ;;  %v768_v17 = vadd.f32 %v767_v14, %v4207_v21  ;;  %v5206_v21 = vld [vmem:[#allocation8_spill] sm:$0xff]  ;;  %v2527_v42 = vld [vmem:[%s3896_s26 + $0x62] sm:$0xff] }
 0x1a3   : > { %v4669_v34 = vadd.f32 %v1750_v47, %v1482_v31  ;;  %3613 = vmatmul.msk.f32.vlgmr.msra.gmra.mxu1 %vm293_vm1, %v4120_v0  ;;  %3655 = vmatmul.msk.f32.vlgmr.msra.gmra.mxu2 %vm293_vm1, %v4123_v1  ;;  %v2526_v0 = vld [vmem:[%s3896_s26 + $0x5a] sm:$0xff] }
 0x1a4   : > { %3697 = vmatmul.msk.f32.vlgmr.msra.gmra.mxu3 %vm293_vm1, %v2525_v43  ;;  %3739 = vmatmul.msk.f32.vlgmr.msra.gmra.mxu0 %vm293_vm1, %v4195_v53  ;;  %v5205_v53 = vld [vmem:[#allocation7_spill] sm:$0xff]  ;;  %v5207_v43 = vld [vmem:[#allocation10_spill] sm:$0xff] }
 0x1a6   : > { %v1069_v57 = vpop.f32.mrf.mxu2 }
 0x1a7   : > { %v1141_v30 = vadd.f32 %v1069_v57, %v768_v17  ;;  %v1411_v19 = vpop.f32.mrf.mxu3 }
 0x1a8   : > { %v770_v9 = vpop.f32.mrf.mxu1 }
 0x1a9   : > { %v1483_v52 = vadd.f32 %v1411_v19, %v1141_v30  ;;  %v1756_v18 = vpop.f32.mrf.mxu0  ;;  %v771_v38 = vadd.f32 %v770_v9, %v5206_v21  ;;  %v5209_v21 = vld [vmem:[#allocation13_spill] sm:$0xff] }
 0x1ab   : > { %v4682_v1 = vadd.f32 %v1753_v22, %v1483_v52  ;;  %3614 = vmatmul.msk.f32.gmra.mxu1 %vm293_vm1, %v1842_v27  ;;  %3656 = vmatmul.msk.f32.gmra.mxu2 %vm293_vm1, %v2184_v15  ;;  %v5208_v22 = vld [vmem:[#allocation11_spill] sm:$0xff] }
 0x1ac   : > { %3698 = vmatmul.msk.f32.gmra.mxu3 %vm293_vm1, %v2526_v0  ;;  %3740 = vmatmul.msk.f32.gmra.mxu0 %vm293_vm1, %v5205_v53  ;;  %v1844_v27 = vld [vmem:[%s3896_s26 + $0x44] sm:$0xff] }
 0x1ad   : > { %v2186_v15 = vld [vmem:[%s3896_s26 + $0x68] sm:$0xff] }
 0x1ae   : > { %v1072_v62 = vpop.f32.mrf.mxu2  ;;  %v2528_v0 = vld [vmem:[%s3896_s26 + $0x6a] sm:$0xff] }
 0x1af   : > { %v1142_v26 = vadd.f32 %v1072_v62, %v771_v38  ;;  %v1414_v47 = vpop.f32.mrf.mxu3  ;;  %v5210_v38 = vld [vmem:[#allocation14_spill] sm:$0xff] }
 0x1b0   : > { %v773_v10 = vpop.f32.mrf.mxu1 }
 0x1b1   : > { %v1484_v11 = vadd.f32 %v1414_v47, %v1142_v26  ;;  %v1759_v14 = vpop.f32.mrf.mxu0  ;;  %v774_v17 = vadd.f32 %v773_v10, %v5208_v22 }
 0x1b3   : > { %v4693_v31 = vadd.f32 %v1756_v18, %v1484_v11  ;;  %3615 = vmatmul.msk.f32.gmra.mxu1 %vm293_vm1, %v1843_v13  ;;  %3657 = vmatmul.msk.f32.gmra.mxu2 %vm293_vm1, %v2185_v46  ;;  %v1845_v46 = vld [vmem:[%s3896_s26 + $0x4c] sm:$0xff] }
 0x1b4   : > { %3699 = vmatmul.msk.f32.gmra.mxu3 %vm293_vm1, %v2527_v42  ;;  %3741 = vmatmul.msk.f32.gmra.mxu0 %vm293_vm1, %v5207_v43  ;;  %v2187_v11 = vld [vmem:[%s3896_s26 + $0x70] sm:$0xff] }
 0x1b6   : > { %v1075_v57 = vpop.f32.mrf.mxu2 }
 0x1b7   : > { %v1143_v30 = vadd.f32 %v1075_v57, %v774_v17  ;;  %v1417_v19 = vpop.f32.mrf.mxu3  ;;  %v5211_v17 = vld [vmem:[#allocation16_spill] sm:$0xff]  ;;  %v5212_v57 = vld [vmem:[#allocation17_spill] sm:$0xff] }
 0x1b8   : > { %v776_v9 = vpop.f32.mrf.mxu1 }
 0x1b9   : > { %v1485_v52 = vadd.f32 %v1417_v19, %v1143_v30  ;;  %v1762_v18 = vpop.f32.mrf.mxu0  ;;  %v777_v62 = vadd.f32 %v776_v9, %v5210_v38 }
 0x1bb   : > { %v4704_v53 = vadd.f32 %v1759_v14, %v1485_v52  ;;  %3616 = vmatmul.msk.f32.gmra.mxu1 %vm293_vm1, %v1844_v27  ;;  %3658 = vmatmul.msk.f32.gmra.mxu2 %vm293_vm1, %v2186_v15  ;;  %v2529_v14 = vld [vmem:[%s3896_s26 + $0x72] sm:$0xff] }
 0x1bc   : > { %3700 = vmatmul.msk.f32.gmra.mxu3 %vm293_vm1, %v2528_v0  ;;  %3742 = vmatmul.msk.f32.gmra.mxu0 %vm293_vm1, %v5209_v21  ;;  %v1846_v52 = vld [vmem:[%s3896_s26 + $0x54] sm:$0xff] }
 0x1bd   : > { %v2188_v0 = vld [vmem:[%s3896_s26 + $0x78] sm:$0xff] }
 0x1be   : > { %v1078_v26 = vpop.f32.mrf.mxu2  ;;  %v2530_v21 = vld [vmem:[%s3896_s26 + $0x7a] sm:$0xff] }
 0x1bf   : > { %v1144_v47 = vadd.f32 %v1078_v26, %v777_v62  ;;  %v1420_v10 = vpop.f32.mrf.mxu3  ;;  %v5213_v26 = vld [vmem:[#allocation19_spill] sm:$0xff] }
 0x1c0   : > { %v779_v13 = vpop.f32.mrf.mxu1 }
 0x1c1   : > { %v1486_v42 = vadd.f32 %v1420_v10, %v1144_v47  ;;  %v1765_v43 = vpop.f32.mrf.mxu0  ;;  %v780_v30 = vadd.f32 %v779_v13, %v5212_v57  ;;  %v5214_v47 = vld [vmem:[#allocation20_spill] sm:$0xff]  ;;  %v2531_v57 = vld [vmem:[%s3896_s26 + $0x82] sm:$0xff] }
 0x1c3   : > { %v4715_v22 = vadd.f32 %v1762_v18, %v1486_v42  ;;  %3617 = vmatmul.msk.f32.gmra.mxu1 %vm293_vm1, %v1845_v46  ;;  %3659 = vmatmul.msk.f32.gmra.mxu2 %vm293_vm1, %v2187_v11 }
 0x1c4   : > { %3701 = vmatmul.msk.f32.gmra.mxu3 %vm293_vm1, %v2529_v14  ;;  %3743 = vmatmul.msk.f32.gmra.mxu0 %vm293_vm1, %v5211_v17  ;;  %v1847_v14 = vld [vmem:[%s3896_s26 + $0x5c] sm:$0xff] }
 0x1c6   : > { %v1081_v19 = vpop.f32.mrf.mxu2 }
 0x1c7   : > { %v1145_v9 = vadd.f32 %v1081_v19, %v780_v30  ;;  %v1423_v27 = vpop.f32.mrf.mxu3 }
 0x1c8   : > { %v782_v15 = vpop.f32.mrf.mxu1 }
 0x1c9   : > { %v1487_v18 = vadd.f32 %v1423_v27, %v1145_v9  ;;  %v1768_v38 = vpop.f32.mrf.mxu0  ;;  %v783_v10 = vadd.f32 %v782_v15, %v5214_v47  ;;  %v5215_v9 = vld [vmem:[#allocation22_spill] sm:$0xff] }
 0x1ca   : > { %v5216_v27 = vld [vmem:[#allocation2_spill] sm:$0xff] }
 0x1cb   : > { %v4726_v62 = vadd.f32 %v1765_v43, %v1487_v18  ;;  %3618 = vmatmul.msk.f32.gmra.mxu1 %vm293_vm1, %v1846_v52  ;;  %3660 = vmatmul.msk.f32.gmra.mxu2 %vm293_vm1, %v2188_v0  ;;  %v2189_v43 = vld [vmem:[%s3896_s26 + $0x80] sm:$0xff] }
 0x1cc   : > { %3702 = vmatmul.msk.f32.gmra.mxu3 %vm293_vm1, %v2530_v21  ;;  %3744 = vmatmul.msk.f32.gmra.mxu0 %vm293_vm1, %v5213_v26  ;;  %v1848_v26 = vld [vmem:[%s3896_s26 + $0x64] sm:$0xff] }
 0x1ce   : > { %v1084_v13 = vpop.f32.mrf.mxu2 }
 0x1cf   : > { %v1146_v46 = vadd.f32 %v1084_v13, %v783_v10  ;;  %v1426_v11 = vpop.f32.mrf.mxu3  ;;  %v2532_v10 = vld [vmem:[%s3896_s26 + $0x8a] sm:$0xff] }
 0x1d0   : > { %v785_v42 = vpop.f32.mrf.mxu1 }
 0x1d1   : > { %v1488_v17 = vadd.f32 %v1426_v11, %v1146_v46  ;;  %v1771_v30 = vpop.f32.mrf.mxu0  ;;  %v786_v15 = vadd.f32 %v785_v42, %v5216_v27  ;;  %v5217_v11 = vld [vmem:[#allocation3_spill] sm:$0xff] }
 0x1d3   : > { %v4737_v19 = vadd.f32 %v1768_v38, %v1488_v17  ;;  %3619 = vmatmul.msk.f32.gmra.mxu1 %vm293_vm1, %v1847_v14  ;;  %3661 = vmatmul.msk.f32.gmra.mxu2 %vm293_vm1, %v2189_v43  ;;  %v2190_v38 = vld [vmem:[%s3896_s26 + $0x88] sm:$0xff] }
 0x1d4   : > { %3703 = vmatmul.msk.f32.gmra.mxu3 %vm293_vm1, %v2531_v57  ;;  %3745 = vmatmul.msk.f32.gmra.mxu0 %vm293_vm1, %v5215_v9  ;;  %v1849_v9 = vld [vmem:[%s3896_s26 + $0x6c] sm:$0xff] }
 0x1d6   : > { %v1087_v52 = vpop.f32.mrf.mxu2 }
 0x1d7   : > { %v1147_v0 = vadd.f32 %v1087_v52, %v786_v15  ;;  %v1429_v18 = vpop.f32.mrf.mxu3  ;;  %v2533_v15 = vld [vmem:[%s3896_s26 + $0x92] sm:$0xff] }
 0x1d8   : > { %v788_v21 = vpop.f32.mrf.mxu1 }
 0x1d9   : > { %v1489_v47 = vadd.f32 %v1429_v18, %v1147_v0  ;;  %v1774_v13 = vpop.f32.mrf.mxu0  ;;  %v789_v42 = vadd.f32 %v788_v21, %v5217_v11 }
 0x1db   : > { %v4748_v46 = vadd.f32 %v1771_v30, %v1489_v47  ;;  %3620 = vmatmul.msk.f32.gmra.mxu1 %vm293_vm1, %v1848_v26  ;;  %3662 = vmatmul.msk.f32.gmra.mxu2 %vm293_vm1, %v2190_v38  ;;  %v2191_v30 = vld [vmem:[%s3896_s26 + $0x90] sm:$0xff] }
 0x1dc   : > { %3704 = vmatmul.msk.f32.gmra.mxu3 %vm293_vm1, %v2532_v10  ;;  %3746 = vmatmul.msk.f32.gmra.mxu0 %vm293_vm1, %v4322_v63  ;;  %v5218_v63 = vld [vmem:[#allocation4_spill] sm:$0xff] }
 0x1dd   : > { %v1850_v10 = vld [vmem:[%s3896_s26 + $0x74] sm:$0xff] }
 0x1de   : > { %v1090_v14 = vpop.f32.mrf.mxu2 }
 0x1df   : > { %v1148_v43 = vadd.f32 %v1090_v14, %v789_v42  ;;  %v1432_v17 = vpop.f32.mrf.mxu3  ;;  %v2534_v42 = vld [vmem:[%s3896_s26 + $0x9a] sm:$0xff] }
 0x1e0   : > { %v791_v57 = vpop.f32.mrf.mxu1 }
 0x1e1   : > { %v1490_v27 = vadd.f32 %v1432_v17, %v1148_v43  ;;  %v1777_v52 = vpop.f32.mrf.mxu0  ;;  %v792_v18 = vadd.f32 %v791_v57, %v5218_v63 }
 0x1e3   : > { %v4759_v0 = vadd.f32 %v1774_v13, %v1490_v27  ;;  %3621 = vmatmul.msk.f32.gmra.mxu1 %vm293_vm1, %v1849_v9  ;;  %3663 = vmatmul.msk.f32.gmra.mxu2 %vm293_vm1, %v2191_v30  ;;  %v2192_v13 = vld [vmem:[%s3896_s26 + $0x98] sm:$0xff] }
 0x1e4   : > { %3705 = vmatmul.msk.f32.gmra.mxu3 %vm293_vm1, %v2533_v15  ;;  %3747 = vmatmul.msk.f32.gmra.mxu0 %vm293_vm1, %v4338_v45  ;;  %v5219_v45 = vld [vmem:[#allocation5_spill] sm:$0xff] }
 0x1e5   : > { %v1851_v15 = vld [vmem:[%s3896_s26 + $0x7c] sm:$0xff] }
 0x1e6   : > { %v1093_v21 = vpop.f32.mrf.mxu2 }
 0x1e7   : > { %v1149_v26 = vadd.f32 %v1093_v21, %v792_v18  ;;  %v1435_v38 = vpop.f32.mrf.mxu3  ;;  %v2535_v18 = vld [vmem:[%s3896_s26 + $0xa2] sm:$0xff] }
 0x1e8   : > { %v794_v47 = vpop.f32.mrf.mxu1 }
 0x1e9   : > { %v1491_v11 = vadd.f32 %v1435_v38, %v1149_v26  ;;  %v1780_v14 = vpop.f32.mrf.mxu0  ;;  %v795_v17 = vadd.f32 %v794_v47, %v5219_v45 }
 0x1eb   : > { %v4770_v43 = vadd.f32 %v1777_v52, %v1491_v11  ;;  %3622 = vmatmul.msk.f32.gmra.mxu1 %vm293_vm1, %v1850_v10  ;;  %3664 = vmatmul.msk.f32.gmra.mxu2 %vm293_vm1, %v2192_v13  ;;  %v2193_v52 = vld [vmem:[%s3896_s26 + $0xa0] sm:$0xff] }
 0x1ec   : > { %3706 = vmatmul.msk.f32.gmra.mxu3 %vm293_vm1, %v2534_v42  ;;  %3748 = vmatmul.msk.f32.gmra.mxu0 %vm293_vm1, %v4354_v51  ;;  %v5220_v51 = vld [vmem:[#allocation6_spill] sm:$0xff] }
 0x1ed   : > { %v1852_v42 = vld [vmem:[%s3896_s26 + $0x84] sm:$0xff] }
 0x1ee   : > { %v1096_v57 = vpop.f32.mrf.mxu2 }
 0x1ef   : > { %v1150_v9 = vadd.f32 %v1096_v57, %v795_v17  ;;  %v1438_v30 = vpop.f32.mrf.mxu3  ;;  %v2536_v17 = vld [vmem:[%s3896_s26 + $0xaa] sm:$0xff] }
 0x1f0   : > { %v797_v27 = vpop.f32.mrf.mxu1 }
 0x1f1   : > { %v1492_v63 = vadd.f32 %v1438_v30, %v1150_v9  ;;  %v1783_v21 = vpop.f32.mrf.mxu0  ;;  %v798_v38 = vadd.f32 %v797_v27, %v5220_v51 }
 0x1f3   : > { %v4781_v26 = vadd.f32 %v1780_v14, %v1492_v63  ;;  %3623 = vmatmul.msk.f32.gmra.mxu1 %vm293_vm1, %v1851_v15  ;;  %3665 = vmatmul.msk.f32.gmra.mxu2 %vm293_vm1, %v2193_v52  ;;  %v2194_v14 = vld [vmem:[%s3896_s26 + $0xa8] sm:$0xff] }
 0x1f4   : > { %3707 = vmatmul.msk.f32.gmra.mxu3 %vm293_vm1, %v2535_v18  ;;  %3749 = vmatmul.msk.f32.gmra.mxu0 %vm293_vm1, %v4371_v28  ;;  %v5221_v28 = vld [vmem:[#allocation9_spill] sm:$0xff]  ;;  %v1853_v18 = vld [vmem:[%s3896_s26 + $0x8c] sm:$0xff] }
 0x1f6   : > { %v1099_v47 = vpop.f32.mrf.mxu2 }
 0x1f7   : > { %v1151_v10 = vadd.f32 %v1099_v47, %v798_v38  ;;  %v1441_v13 = vpop.f32.mrf.mxu3  ;;  %v2537_v38 = vld [vmem:[%s3896_s26 + $0xb2] sm:$0xff] }
 0x1f8   : > { %v800_v11 = vpop.f32.mrf.mxu1 }
 0x1f9   : > { %v1493_v45 = vadd.f32 %v1441_v13, %v1151_v10  ;;  %v1786_v57 = vpop.f32.mrf.mxu0  ;;  %v801_v30 = vadd.f32 %v800_v11, %v5221_v28 }
 0x1fb   : > { %v4792_v9 = vadd.f32 %v1783_v21, %v1493_v45  ;;  %3624 = vmatmul.msk.f32.gmra.mxu1 %vm293_vm1, %v1852_v42  ;;  %3666 = vmatmul.msk.f32.gmra.mxu2 %vm293_vm1, %v2194_v14  ;;  %v2195_v21 = vld [vmem:[%s3896_s26 + $0xb0] sm:$0xff] }
 0x1fc   : > { %3708 = vmatmul.msk.f32.gmra.mxu3 %vm293_vm1, %v2536_v17  ;;  %3750 = vmatmul.msk.f32.gmra.mxu0 %vm293_vm1, %v4388_v39  ;;  %v5222_v39 = vld [vmem:[#allocation12_spill] sm:$0xff] }
 0x1fd   : > { %v1854_v17 = vld [vmem:[%s3896_s26 + $0x94] sm:$0xff] }
 0x1fe   : > { %v1102_v27 = vpop.f32.mrf.mxu2 }
 0x1ff   : > { %v1152_v15 = vadd.f32 %v1102_v27, %v801_v30  ;;  %v1444_v52 = vpop.f32.mrf.mxu3  ;;  %v2538_v30 = vld [vmem:[%s3896_s26 + $0xba] sm:$0xff] }
 0x200   : > { %v803_v63 = vpop.f32.mrf.mxu1 }
 0x201   : > { %v1494_v51 = vadd.f32 %v1444_v52, %v1152_v15  ;;  %v1789_v47 = vpop.f32.mrf.mxu0  ;;  %v804_v13 = vadd.f32 %v803_v63, %v5222_v39 }
 0x203   : > { %v4803_v10 = vadd.f32 %v1786_v57, %v1494_v51  ;;  %3625 = vmatmul.msk.f32.gmra.mxu1 %vm293_vm1, %v1853_v18  ;;  %3667 = vmatmul.msk.f32.gmra.mxu2 %vm293_vm1, %v2195_v21  ;;  %v2196_v57 = vld [vmem:[%s3896_s26 + $0xb8] sm:$0xff] }
 0x204   : > { %3709 = vmatmul.msk.f32.gmra.mxu3 %vm293_vm1, %v2537_v38  ;;  %3751 = vmatmul.msk.f32.gmra.mxu0 %vm293_vm1, %v4405_v50  ;;  %v5223_v50 = vld [vmem:[#allocation15_spill] sm:$0xff]  ;;  %v1855_v38 = vld [vmem:[%s3896_s26 + $0x9c] sm:$0xff] }
 0x206   : > { %v1105_v11 = vpop.f32.mrf.mxu2 }
 0x207   : > { %v1153_v42 = vadd.f32 %v1105_v11, %v804_v13  ;;  %v1447_v14 = vpop.f32.mrf.mxu3  ;;  %v2539_v13 = vld [vmem:[%s3896_s26 + $0xc2] sm:$0xff] }
 0x208   : > { %v806_v45 = vpop.f32.mrf.mxu1 }
 0x209   : > { %v1495_v28 = vadd.f32 %v1447_v14, %v1153_v42  ;;  %v1792_v27 = vpop.f32.mrf.mxu0  ;;  %v807_v52 = vadd.f32 %v806_v45, %v5223_v50 }
 0x20b   : > { %v4814_v15 = vadd.f32 %v1789_v47, %v1495_v28  ;;  %3626 = vmatmul.msk.f32.gmra.mxu1 %vm293_vm1, %v1854_v17  ;;  %3668 = vmatmul.msk.f32.gmra.mxu2 %vm293_vm1, %v2196_v57  ;;  %v2197_v47 = vld [vmem:[%s3896_s26 + $0xc0] sm:$0xff] }
 0x20c   : > { %3710 = vmatmul.msk.f32.gmra.mxu3 %vm293_vm1, %v2538_v30  ;;  %3752 = vmatmul.msk.f32.gmra.mxu0 %vm293_vm1, %v4422_v55  ;;  %v5224_v55 = vld [vmem:[#allocation18_spill] sm:$0xff] }
 0x20d   : > { %v1856_v30 = vld [vmem:[%s3896_s26 + $0xa4] sm:$0xff] }
 0x20e   : > { %v1108_v63 = vpop.f32.mrf.mxu2 }
 0x20f   : > { %v1154_v18 = vadd.f32 %v1108_v63, %v807_v52  ;;  %v1450_v21 = vpop.f32.mrf.mxu3  ;;  %v2540_v52 = vld [vmem:[%s3896_s26 + $0xca] sm:$0xff] }
 0x210   : > { %v809_v51 = vpop.f32.mrf.mxu1 }
 0x211   : > { %v1496_v39 = vadd.f32 %v1450_v21, %v1154_v18  ;;  %v1795_v11 = vpop.f32.mrf.mxu0  ;;  %v810_v14 = vadd.f32 %v809_v51, %v5224_v55 }
 0x213   : > { %v4825_v42 = vadd.f32 %v1792_v27, %v1496_v39  ;;  %3627 = vmatmul.msk.f32.gmra.mxu1 %vm293_vm1, %v1855_v38  ;;  %3669 = vmatmul.msk.f32.gmra.mxu2 %vm293_vm1, %v2197_v47  ;;  %v2198_v27 = vld [vmem:[%s3896_s26 + $0xc8] sm:$0xff] }
 0x214   : > { %3711 = vmatmul.msk.f32.gmra.mxu3 %vm293_vm1, %v2539_v13  ;;  %3753 = vmatmul.msk.f32.gmra.mxu0 %vm293_vm1, %v4439_v60  ;;  %v5225_v60 = vld [vmem:[#allocation21_spill] sm:$0xff]  ;;  %v1857_v13 = vld [vmem:[%s3896_s26 + $0xac] sm:$0xff] }
 0x216   : > { %v1111_v45 = vpop.f32.mrf.mxu2 }
 0x217   : > { %v1155_v17 = vadd.f32 %v1111_v45, %v810_v14  ;;  %v1453_v57 = vpop.f32.mrf.mxu3  ;;  %v2541_v14 = vld [vmem:[%s3896_s26 + $0xd2] sm:$0xff] }
 0x218   : > { %v812_v28 = vpop.f32.mrf.mxu1 }
 0x219   : > { %v1497_v50 = vadd.f32 %v1453_v57, %v1155_v17  ;;  %v1798_v63 = vpop.f32.mrf.mxu0  ;;  %v813_v21 = vadd.f32 %v812_v28, %v5225_v60  ;;  %v2542_v60 = vld [vmem:[%s3896_s26 + $0xda] sm:$0xff] }
 0x21b   : > { %v4836_v18 = vadd.f32 %v1795_v11, %v1497_v50  ;;  %3628 = vmatmul.msk.f32.gmra.mxu1 %vm293_vm1, %v1856_v30  ;;  %3670 = vmatmul.msk.f32.gmra.mxu2 %vm293_vm1, %v2198_v27  ;;  %v2199_v11 = vld [vmem:[%s3896_s26 + $0xd0] sm:$0xff] }
 0x21c   : > { %3712 = vmatmul.msk.f32.gmra.mxu3 %vm293_vm1, %v2540_v52  ;;  %3754 = vmatmul.msk.f32.gmra.mxu0 %vm293_vm1, %v4456_v4  ;;  %v1858_v50 = vld [vmem:[%s3896_s26 + $0xb4] sm:$0xff] }
 0x21d   : > { %v2200_v52 = vld [vmem:[%s3896_s26 + $0xd8] sm:$0xff] }
 0x21e   : > { %v1114_v51 = vpop.f32.mrf.mxu2 }
 0x21f   : > { %v1156_v38 = vadd.f32 %v1114_v51, %v813_v21  ;;  %v1456_v47 = vpop.f32.mrf.mxu3 }
 0x220   : > { %v2023_v39 = vpop.f32.mrf.mxu1 }
 0x221   : > { %v1498_v55 = vadd.f32 %v1456_v47, %v1156_v38  ;;  %v3049_v45 = vpop.f32.mrf.mxu0  ;;  %v2143_v4 = vadd.f32 %v2023_v39, %v4327_v58 }
 0x223   : > { %v4847_v17 = vadd.f32 %v1798_v63, %v1498_v55  ;;  %3629 = vmatmul.msk.f32.gmra.mxu1 %vm293_vm1, %v1857_v13  ;;  %3671 = vmatmul.msk.f32.gmra.mxu2 %vm293_vm1, %v2199_v11  ;;  %v1859_v11 = vld [vmem:[%s3896_s26 + $0xbc] sm:$0xff] }
 0x224   : > { %3713 = vmatmul.msk.f32.gmra.mxu3 %vm293_vm1, %v2541_v14  ;;  %3755 = vmatmul.msk.f32.gmra.mxu0 %vm293_vm1, %v4473_v24  ;;  %v2201_v55 = vld [vmem:[%s3896_s26 + $0xe0] sm:$0xff] }
 0x226   : > { %v2365_v57 = vpop.f32.mrf.mxu2 }
 0x227   : > { %v2485_v28 = vadd.f32 %v2365_v57, %v2143_v4  ;;  %v2707_v30 = vpop.f32.mrf.mxu3 }
 0x228   : > { %v2026_v27 = vpop.f32.mrf.mxu1 }
 0x229   : > { %v2827_v63 = vadd.f32 %v2707_v30, %v2485_v28  ;;  %v3052_v21 = vpop.f32.mrf.mxu0  ;;  %v2144_v58 = vadd.f32 %v2026_v27, %v4343_v59 }
 0x22b   : > { %v3169_v51 = vadd.f32 %v3049_v45, %v2827_v63  ;;  %3630 = vmatmul.msk.f32.gmra.mxu1 %vm293_vm1, %v1858_v50  ;;  %3672 = vmatmul.msk.f32.gmra.mxu2 %vm293_vm1, %v2200_v52  ;;  %v2543_v45 = vld [vmem:[%s3896_s26 + $0xe2] sm:$0xff] }
 0x22c   : > { %3714 = vmatmul.msk.f32.gmra.mxu3 %vm293_vm1, %v2542_v60  ;;  %3756 = vmatmul.msk.f32.gmra.mxu0 %vm293_vm1, %v4490_v35  ;;  %v1860_v52 = vld [vmem:[%s3896_s26 + $0xc4] sm:$0xff] }
 0x22d   : > { %v3209_v24 = vmax.f32 %v3169_v51, 0.0  ;;  %v2202_v63 = vld [vmem:[%s3896_s26 + $0xe8] sm:$0xff] }
 0x22e   : > { %v2368_v38 = vpop.f32.mrf.mxu2 }
 0x22f   : > { %3249 = vst [vmem:[%s4864_s14] sm:$0xff] %v3209_v24  ;;  %v2486_v47 = vadd.f32 %v2368_v38, %v2144_v58  ;;  %v2710_v39 = vpop.f32.mrf.mxu3 }
 0x230   : > { %v2029_v13 = vpop.f32.mrf.mxu1 }
 0x231   : > { %v2828_v14 = vadd.f32 %v2710_v39, %v2486_v47  ;;  %v3055_v4 = vpop.f32.mrf.mxu0  ;;  %v2145_v59 = vadd.f32 %v2029_v13, %v4359_v3  ;;  %v1861_v13 = vld [vmem:[%s3896_s26 + $0xcc] sm:$0xff] }
 0x233   : > { %v3170_v57 = vadd.f32 %v3052_v21, %v2828_v14  ;;  %3631 = vmatmul.msk.f32.gmra.mxu1 %vm293_vm1, %v1859_v11  ;;  %3673 = vmatmul.msk.f32.gmra.mxu2 %vm293_vm1, %v2201_v55  ;;  %v2544_v21 = vld [vmem:[%s3896_s26 + $0xea] sm:$0xff]  ;;  %v2545_v14 = vld [vmem:[%s3896_s26 + $0xf2] sm:$0xff] }
 0x234   : > { %3715 = vmatmul.msk.f32.gmra.mxu3 %vm293_vm1, %v2543_v45  ;;  %3757 = vmatmul.msk.f32.gmra.mxu0 %vm293_vm1, %v4507_v36  ;;  %v2203_v11 = vld [vmem:[%s3896_s26 + $0xf0] sm:$0xff] }
 0x235   : > { %v3210_v35 = vmax.f32 %v3170_v57, 0.0 }
 0x236   : > { %v2371_v28 = vpop.f32.mrf.mxu2 }
 0x237   : > { %3250 = vst [vmem:[%s4864_s14 + $0x8] sm:$0xff] %v3210_v35  ;;  %v2487_v30 = vadd.f32 %v2371_v28, %v2145_v59  ;;  %v2713_v27 = vpop.f32.mrf.mxu3 }
 0x238   : > { %v2032_v50 = vpop.f32.mrf.mxu1 }
 0x239   : > { %v2829_v60 = vadd.f32 %v2713_v27, %v2487_v30  ;;  %v3058_v51 = vpop.f32.mrf.mxu0  ;;  %v2146_v3 = vadd.f32 %v2032_v50, %v4376_v61  ;;  %v1862_v30 = vld [vmem:[%s3896_s26 + $0xd4] sm:$0xff] }
 0x23a   : > { %v2204_v27 = vld [vmem:[%s3896_s26 + $0xf8] sm:$0xff] }
 0x23b   : > { %v3171_v58 = vadd.f32 %v3055_v4, %v2829_v60  ;;  %3632 = vmatmul.msk.f32.gmra.mxu1 %vm293_vm1, %v1860_v52  ;;  %3674 = vmatmul.msk.f32.gmra.mxu2 %vm293_vm1, %v2202_v63  ;;  %v2546_v52 = vld [vmem:[%s3896_s26 + $0xfa] sm:$0xff] }
 0x23c   : > { %3716 = vmatmul.msk.f32.gmra.mxu3 %vm293_vm1, %v2544_v21  ;;  %3758 = vmatmul.msk.f32.gmra.mxu0 %vm293_vm1, %v4524_v2  ;;  %v4905_v60 = vld [vmem:[%s3896_s26 + $0xfc] sm:$0xff] }
 0x23d   : > { %v3211_v36 = vmax.f32 %v3171_v58, 0.0 }
 0x23e   : > { %v2374_v24 = vpop.f32.mrf.mxu2 }
 0x23f   : > { %3251 = vst [vmem:[%s4864_s14 + $0x10] sm:$0xff] %v3211_v36  ;;  %v2488_v38 = vadd.f32 %v2374_v24, %v2146_v3  ;;  %v2716_v47 = vpop.f32.mrf.mxu3  ;;  %v1863_v24 = vld [vmem:[%s3896_s26 + $0xdc] sm:$0xff] }
 0x240   : > { %v2035_v39 = vpop.f32.mrf.mxu1 }
 0x241   : > { %v2830_v55 = vadd.f32 %v2716_v47, %v2488_v38  ;;  %v3061_v45 = vpop.f32.mrf.mxu0  ;;  %v2147_v61 = vadd.f32 %v2035_v39, %v4393_v40  ;;  %v2205_v38 = vld [vmem:[%s3896_s26 + $0x100] sm:$0xff] }
 0x242   : > { %v2547_v39 = vld [vmem:[%s3896_s26 + $0x102] sm:$0xff] }
 0x243   : > { %v3172_v4 = vadd.f32 %v3058_v51, %v2830_v55  ;;  %3633 = vmatmul.msk.f32.gmra.mxu1 %vm293_vm1, %v1861_v13  ;;  %3675 = vmatmul.msk.f32.gmra.mxu2 %vm293_vm1, %v2203_v11  ;;  %v4918_v11 = vld [vmem:[%s3896_s26 + $0x104] sm:$0xff] }
 0x244   : > { %3717 = vmatmul.msk.f32.gmra.mxu3 %vm293_vm1, %v2545_v14  ;;  %3759 = vmatmul.msk.f32.gmra.mxu0 %vm293_vm1, %v4541_v16 }
 0x245   : > { %v3212_v2 = vmax.f32 %v3172_v4, 0.0 }
 0x246   : > { %v2377_v57 = vpop.f32.mrf.mxu2 }
 0x247   : > { %3252 = vst [vmem:[%s4864_s14 + $0x18] sm:$0xff] %v3212_v2  ;;  %v2489_v59 = vadd.f32 %v2377_v57, %v2147_v61  ;;  %v2719_v35 = vpop.f32.mrf.mxu3  ;;  %v1864_v57 = vld [vmem:[%s3896_s26 + $0xe4] sm:$0xff] }
 0x248   : > { %v2038_v28 = vpop.f32.mrf.mxu1 }
 0x249   : > { %v2831_v50 = vadd.f32 %v2719_v35, %v2489_v59  ;;  %v3064_v63 = vpop.f32.mrf.mxu0  ;;  %v2148_v40 = vadd.f32 %v2038_v28, %v4410_v49  ;;  %v2206_v59 = vld [vmem:[%s3896_s26 + $0x108] sm:$0xff] }
 0x24a   : > { %v2548_v28 = vld [vmem:[%s3896_s26 + $0x10a] sm:$0xff] }
 0x24b   : > { %v3173_v16 = vadd.f32 %v3061_v45, %v2831_v50  ;;  %3634 = vmatmul.msk.f32.gmra.mxu1 %vm293_vm1, %v1862_v30  ;;  %3676 = vmatmul.msk.f32.gmra.mxu2 %vm293_vm1, %v2204_v27  ;;  %v4931_v27 = vld [vmem:[%s3896_s26 + $0x10c] sm:$0xff] }
 0x24c   : > { %3718 = vmatmul.msk.f32.gmra.mxu3 %vm293_vm1, %v2546_v52  ;;  %3760 = vmatmul.msk.f32.gmra.mxu0 %vm293_vm1, %v4905_v60 }
 0x24d   : > { %v3213_v21 = vmax.f32 %v3173_v16, 0.0 }
 0x24e   : > { %v2380_v51 = vpop.f32.mrf.mxu2 }
 0x24f   : > { %3253 = vst [vmem:[%s4864_s14 + $0x20] sm:$0xff] %v3213_v21  ;;  %v2490_v58 = vadd.f32 %v2380_v51, %v2148_v40  ;;  %v2722_v3 = vpop.f32.mrf.mxu3  ;;  %v1865_v51 = vld [vmem:[%s3896_s26 + $0xec] sm:$0xff] }
 0x250   : > { %v2041_v36 = vpop.f32.mrf.mxu1 }
 0x251   : > { %v2832_v47 = vadd.f32 %v2722_v3, %v2490_v58  ;;  %v3067_v13 = vpop.f32.mrf.mxu0  ;;  %v2149_v49 = vadd.f32 %v2041_v36, %v4427_v48  ;;  %v2207_v58 = vld [vmem:[%s3896_s26 + $0x110] sm:$0xff] }
 0x252   : > { %v2549_v36 = vld [vmem:[%s3896_s26 + $0x112] sm:$0xff] }
 0x253   : > { %v3174_v55 = vadd.f32 %v3064_v63, %v2832_v47  ;;  %3635 = vmatmul.msk.f32.gmra.mxu1 %vm293_vm1, %v1863_v24  ;;  %3677 = vmatmul.msk.f32.gmra.mxu2 %vm293_vm1, %v2205_v38  ;;  %v4944_v38 = vld [vmem:[%s3896_s26 + $0x114] sm:$0xff] }
 0x254   : > { %3719 = vmatmul.msk.f32.gmra.mxu3 %vm293_vm1, %v2547_v39  ;;  %3761 = vmatmul.msk.f32.gmra.mxu0 %vm293_vm1, %v4918_v11 }
 0x255   : > { %v3214_v14 = vmax.f32 %v3174_v55, 0.0 }
 0x256   : > { %v2383_v45 = vpop.f32.mrf.mxu2 }
 0x257   : > { %3254 = vst [vmem:[%s4864_s14 + $0x28] sm:$0xff] %v3214_v14  ;;  %v2491_v4 = vadd.f32 %v2383_v45, %v2149_v49  ;;  %v2725_v61 = vpop.f32.mrf.mxu3  ;;  %v1866_v45 = vld [vmem:[%s3896_s26 + $0xf4] sm:$0xff] }
 0x258   : > { %v2044_v2 = vpop.f32.mrf.mxu1 }
 0x259   : > { %v2833_v35 = vadd.f32 %v2725_v61, %v2491_v4  ;;  %v3070_v30 = vpop.f32.mrf.mxu0  ;;  %v2150_v48 = vadd.f32 %v2044_v2, %v4444_v25  ;;  %v2208_v4 = vld [vmem:[%s3896_s26 + $0x118] sm:$0xff] }
 0x25a   : > { %v2550_v2 = vld [vmem:[%s3896_s26 + $0x11a] sm:$0xff] }
 0x25b   : > { %v3175_v50 = vadd.f32 %v3067_v13, %v2833_v35  ;;  %3636 = vmatmul.msk.f32.gmra.mxu1 %vm293_vm1, %v1864_v57  ;;  %3678 = vmatmul.msk.f32.gmra.mxu2 %vm293_vm1, %v2206_v59  ;;  %v4957_v59 = vld [vmem:[%s3896_s26 + $0x11c] sm:$0xff] }
 0x25c   : > { %3720 = vmatmul.msk.f32.gmra.mxu3 %vm293_vm1, %v2548_v28  ;;  %3762 = vmatmul.msk.f32.gmra.mxu0 %vm293_vm1, %v4931_v27 }
 0x25d   : > { %v3215_v52 = vmax.f32 %v3175_v50, 0.0 }
 0x25e   : > { %v2386_v63 = vpop.f32.mrf.mxu2 }
 0x25f   : > { %3255 = vst [vmem:[%s4864_s14 + $0x30] sm:$0xff] %v3215_v52  ;;  %v2492_v16 = vadd.f32 %v2386_v63, %v2150_v48  ;;  %v2728_v40 = vpop.f32.mrf.mxu3  ;;  %v2209_v63 = vld [vmem:[%s3896_s26 + $0x120] sm:$0xff] }
 0x260   : > { %v2047_v21 = vpop.f32.mrf.mxu1 }
 0x261   : > { %v2834_v3 = vadd.f32 %v2728_v40, %v2492_v16  ;;  %v3073_v24 = vpop.f32.mrf.mxu0  ;;  %v2151_v25 = vadd.f32 %v2047_v21, %v4461_v54  ;;  %v2551_v40 = vld [vmem:[%s3896_s26 + $0x122] sm:$0xff] }
 0x263   : > { %v3176_v47 = vadd.f32 %v3070_v30, %v2834_v3  ;;  %3637 = vmatmul.msk.f32.gmra.mxu1 %vm293_vm1, %v1865_v51  ;;  %3679 = vmatmul.msk.f32.gmra.mxu2 %vm293_vm1, %v2207_v58  ;;  %v4969_v51 = vld [vmem:[%s3896_s26 + $0x124] sm:$0xff] }
 0x264   : > { %3721 = vmatmul.msk.f32.gmra.mxu3 %vm293_vm1, %v2549_v36  ;;  %3763 = vmatmul.msk.f32.gmra.mxu0 %vm293_vm1, %v4944_v38 }
 0x265   : > { %v3216_v39 = vmax.f32 %v3176_v47, 0.0 }
 0x266   : > { %v2389_v13 = vpop.f32.mrf.mxu2 }
 0x267   : > { %3256 = vst [vmem:[%s4864_s14 + $0x38] sm:$0xff] %v3216_v39  ;;  %v2493_v55 = vadd.f32 %v2389_v13, %v2151_v25  ;;  %v2731_v49 = vpop.f32.mrf.mxu3  ;;  %v2210_v39 = vld [vmem:[%s3896_s26 + $0x128] sm:$0xff] }
 0x268   : > { %v2050_v14 = vpop.f32.mrf.mxu1 }
 0x269   : > { %v2835_v61 = vadd.f32 %v2731_v49, %v2493_v55  ;;  %v3076_v57 = vpop.f32.mrf.mxu0  ;;  %v2152_v54 = vadd.f32 %v2050_v14, %v4478_v5  ;;  %v4982_v49 = vld [vmem:[%s3896_s26 + $0x12c] sm:$0xff] }
 0x26b   : > { %v3177_v35 = vadd.f32 %v3073_v24, %v2835_v61  ;;  %3638 = vmatmul.msk.f32.gmra.mxu1 %vm293_vm1, %v1866_v45  ;;  %3680 = vmatmul.msk.f32.gmra.mxu2 %vm293_vm1, %v2208_v4 }
 0x26c   : > { %3722 = vmatmul.msk.f32.gmra.mxu3 %vm293_vm1, %v2550_v2  ;;  %3764 = vmatmul.msk.f32.gmra.mxu0 %vm293_vm1, %v4957_v59 }
 0x26d   : > { %v3217_v28 = vmax.f32 %v3177_v35, 0.0  ;;  %v2211_v35 = vld [vmem:[%s3896_s26 + $0x130] sm:$0xff] }
 0x26e   : > { %v2392_v30 = vpop.f32.mrf.mxu2 }
 0x26f   : > { %3257 = vst [vmem:[%s4864_s14 + $0x40] sm:$0xff] %v3217_v28  ;;  %v2494_v50 = vadd.f32 %v2392_v30, %v2152_v54  ;;  %v2734_v48 = vpop.f32.mrf.mxu3  ;;  %v4995_v30 = vld [vmem:[%s3896_s26 + $0x134] sm:$0xff] }
 0x270   : > { %v2053_v52 = vpop.f32.mrf.mxu1 }
 0x271   : > { %v2836_v16 = vadd.f32 %v2734_v48, %v2494_v50  ;;  %v3079_v21 = vpop.f32.mrf.mxu0  ;;  %v2153_v5 = vadd.f32 %v2053_v52, %v4495_v29 }
 0x273   : > { %v3178_v58 = vadd.f32 %v3076_v57, %v2836_v16  ;;  %3639 = vmatmul.msk.f32.gmra.mxu1 %vm293_vm1, %v4905_v60  ;;  %3681 = vmatmul.msk.f32.gmra.mxu2 %vm293_vm1, %v2209_v63  ;;  %v2552_v60 = vld [vmem:[%s3896_s26 + $0x12a] sm:$0xff] }
 0x274   : > { %3723 = vmatmul.msk.f32.gmra.mxu3 %vm293_vm1, %v2551_v40  ;;  %3765 = vmatmul.msk.f32.gmra.mxu0 %vm293_vm1, %v4969_v51 }
 0x275   : > { %v3218_v3 = vmax.f32 %v3178_v58, 0.0 }
 0x276   : > { %v2395_v36 = vpop.f32.mrf.mxu2 }
 0x277   : > { %3258 = vst [vmem:[%s4864_s14 + $0x48] sm:$0xff] %v3218_v3  ;;  %v2495_v24 = vadd.f32 %v2395_v36, %v2153_v5  ;;  %v2737_v47 = vpop.f32.mrf.mxu3  ;;  %v5008_v3 = vld [vmem:[%s3896_s26 + $0x13c] sm:$0xff] }
 0x278   : > { %v2056_v25 = vpop.f32.mrf.mxu1 }
 0x279   : > { %v2837_v13 = vadd.f32 %v2737_v47, %v2495_v24  ;;  %v3082_v55 = vpop.f32.mrf.mxu0  ;;  %v2154_v29 = vadd.f32 %v2056_v25, %v4512_v41 }
 0x27b   : > { %v3179_v14 = vadd.f32 %v3079_v21, %v2837_v13  ;;  %3640 = vmatmul.msk.f32.gmra.mxu1 %vm293_vm1, %v4918_v11  ;;  %3682 = vmatmul.msk.f32.gmra.mxu2 %vm293_vm1, %v2210_v39  ;;  %v2553_v11 = vld [vmem:[%s3896_s26 + $0x132] sm:$0xff] }
 0x27c   : > { %3724 = vmatmul.msk.f32.gmra.mxu3 %vm293_vm1, %v2552_v60  ;;  %3766 = vmatmul.msk.f32.gmra.mxu0 %vm293_vm1, %v4982_v49  ;;  %v2212_v21 = vld [vmem:[%s3896_s26 + $0x138] sm:$0xff]  ;;  %v2213_v60 = vld [vmem:[%s3896_s26 + $0x140] sm:$0xff] }
 0x27d   : > { %v3219_v45 = vmax.f32 %v3179_v14, 0.0 }
 0x27e   : > { %v2398_v4 = vpop.f32.mrf.mxu2 }
 0x27f   : > { %3259 = vst [vmem:[%s4864_s14 + $0x50] sm:$0xff] %v3219_v45  ;;  %v2496_v61 = vadd.f32 %v2398_v4, %v2154_v29  ;;  %v2740_v2 = vpop.f32.mrf.mxu3  ;;  %v5021_v29 = vld [vmem:[%s3896_s26 + $0x144] sm:$0xff] }
 0x280   : > { %v2059_v57 = vpop.f32.mrf.mxu1 }
 0x281   : > { %v2838_v54 = vadd.f32 %v2740_v2, %v2496_v61  ;;  %v3085_v28 = vpop.f32.mrf.mxu0  ;;  %v2155_v41 = vadd.f32 %v2059_v57, %v4529_v8 }
 0x283   : > { %v3180_v50 = vadd.f32 %v3082_v55, %v2838_v54  ;;  %3641 = vmatmul.msk.f32.gmra.mxu1 %vm293_vm1, %v4931_v27  ;;  %3683 = vmatmul.msk.f32.gmra.mxu2 %vm293_vm1, %v2211_v35  ;;  %v2554_v27 = vld [vmem:[%s3896_s26 + $0x13a] sm:$0xff]  ;;  %v2214_v54 = vld [vmem:[%s3896_s26 + $0x148] sm:$0xff] }
 0x284   : > { %3725 = vmatmul.msk.f32.gmra.mxu3 %vm293_vm1, %v2553_v11  ;;  %3767 = vmatmul.msk.f32.gmra.mxu0 %vm293_vm1, %v4995_v30 }
 0x285   : > { %v3220_v48 = vmax.f32 %v3180_v50, 0.0  ;;  %v5034_v50 = vld [vmem:[%s3896_s26 + $0x14c] sm:$0xff] }
 0x286   : > { %v2401_v52 = vpop.f32.mrf.mxu2 }
 0x287   : > { %3260 = vst [vmem:[%s4864_s14 + $0x58] sm:$0xff] %v3220_v48  ;;  %v2497_v63 = vadd.f32 %v2401_v52, %v2155_v41  ;;  %v2743_v16 = vpop.f32.mrf.mxu3 }
 0x288   : > { %v2062_v40 = vpop.f32.mrf.mxu1 }
 0x289   : > { %v2839_v58 = vadd.f32 %v2743_v16, %v2497_v63  ;;  %v3088_v5 = vpop.f32.mrf.mxu0  ;;  %v2156_v8 = vadd.f32 %v2062_v40, %v4546_v6 }
 0x28b   : > { %v3181_v36 = vadd.f32 %v3085_v28, %v2839_v58  ;;  %3642 = vmatmul.msk.f32.gmra.mxu1 %vm293_vm1, %v4944_v38  ;;  %3684 = vmatmul.msk.f32.gmra.mxu2 %vm293_vm1, %v2212_v21  ;;  %v2555_v38 = vld [vmem:[%s3896_s26 + $0x142] sm:$0xff]  ;;  %v2215_v21 = vld [vmem:[%s3896_s26 + $0x150] sm:$0xff] }
 0x28c   : > { %3726 = vmatmul.msk.f32.gmra.mxu3 %vm293_vm1, %v2554_v27  ;;  %3768 = vmatmul.msk.f32.gmra.mxu0 %vm293_vm1, %v5008_v3 }
 0x28d   : > { %v3221_v24 = vmax.f32 %v3181_v36, 0.0 }
 0x28e   : > { %v2404_v47 = vpop.f32.mrf.mxu2 }
 0x28f   : > { %3261 = vst [vmem:[%s4864_s14 + $0x60] sm:$0xff] %v3221_v24  ;;  %v2498_v25 = vadd.f32 %v2404_v47, %v2156_v8  ;;  %v2746_v39 = vpop.f32.mrf.mxu3 }
 0x290   : > { %v2065_v13 = vpop.f32.mrf.mxu1 }
 0x291   : > { %v2840_v55 = vadd.f32 %v2746_v39, %v2498_v25  ;;  %v3091_v14 = vpop.f32.mrf.mxu0  ;;  %v2157_v6 = vadd.f32 %v2065_v13, %v4561_v20  ;;  %v2216_v13 = vld [vmem:[%s3896_s26 + $0x158] sm:$0xff] }
 0x293   : > { %v3182_v45 = vadd.f32 %v3088_v5, %v2840_v55  ;;  %3643 = vmatmul.msk.f32.gmra.mxu1 %vm293_vm1, %v4957_v59  ;;  %3685 = vmatmul.msk.f32.gmra.mxu2 %vm293_vm1, %v2213_v60  ;;  %v2556_v59 = vld [vmem:[%s3896_s26 + $0x14a] sm:$0xff]  ;;  %v5047_v5 = vld [vmem:[%s3896_s26 + $0x154] sm:$0xff] }
 0x294   : > { %3727 = vmatmul.msk.f32.gmra.mxu3 %vm293_vm1, %v2555_v38  ;;  %3769 = vmatmul.msk.f32.gmra.mxu0 %vm293_vm1, %v5021_v29  ;;  %v5060_v38 = vld [vmem:[%s3896_s26 + $0x15c] sm:$0xff] }
 0x295   : > { %v3222_v4 = vmax.f32 %v3182_v45, 0.0 }
 0x296   : > { %v2407_v61 = vpop.f32.mrf.mxu2 }
 0x297   : > { %3262 = vst [vmem:[%s4864_s14 + $0x68] sm:$0xff] %v3222_v4  ;;  %v2499_v2 = vadd.f32 %v2407_v61, %v2157_v6  ;;  %v2749_v57 = vpop.f32.mrf.mxu3 }
 0x298   : > { %v2068_v35 = vpop.f32.mrf.mxu1 }
 0x299   : > { %v2841_v11 = vadd.f32 %v2749_v57, %v2499_v2  ;;  %v3094_v28 = vpop.f32.mrf.mxu0  ;;  %v2158_v20 = vadd.f32 %v2068_v35, %v4575_v33  ;;  %v2217_v57 = vld [vmem:[%s3896_s26 + $0x160] sm:$0xff] }
 0x29b   : > { %v3183_v41 = vadd.f32 %v3091_v14, %v2841_v11  ;;  %3644 = vmatmul.msk.f32.gmra.mxu1 %vm293_vm1, %v4969_v51  ;;  %3686 = vmatmul.msk.f32.gmra.mxu2 %vm293_vm1, %v2214_v54  ;;  %v2557_v51 = vld [vmem:[%s3896_s26 + $0x152] sm:$0xff]  ;;  %v5073_v11 = vld [vmem:[%s3896_s26 + $0x164] sm:$0xff] }
 0x29c   : > { %3728 = vmatmul.msk.f32.gmra.mxu3 %vm293_vm1, %v2556_v59  ;;  %3770 = vmatmul.msk.f32.gmra.mxu0 %vm293_vm1, %v5034_v50 }
 0x29d   : > { %v3223_v48 = vmax.f32 %v3183_v41, 0.0 }
 0x29e   : > { %v2410_v52 = vpop.f32.mrf.mxu2 }
 0x29f   : > { %3263 = vst [vmem:[%s4864_s14 + $0x70] sm:$0xff] %v3223_v48  ;;  %v2500_v63 = vadd.f32 %v2410_v52, %v2158_v20  ;;  %v2752_v16 = vpop.f32.mrf.mxu3 }
 0x2a0   : > { %v2071_v40 = vpop.f32.mrf.mxu1 }
 0x2a1   : > { %v2842_v58 = vadd.f32 %v2752_v16, %v2500_v63  ;;  %v3097_v27 = vpop.f32.mrf.mxu0  ;;  %v2159_v33 = vadd.f32 %v2071_v40, %v4589_v23  ;;  %v2218_v63 = vld [vmem:[%s3896_s26 + $0x168] sm:$0xff] }
 0x2a3   : > { %v3184_v36 = vadd.f32 %v3094_v28, %v2842_v58  ;;  %3645 = vmatmul.msk.f32.gmra.mxu1 %vm293_vm1, %v4982_v49  ;;  %3687 = vmatmul.msk.f32.gmra.mxu2 %vm293_vm1, %v2215_v21  ;;  %v2558_v49 = vld [vmem:[%s3896_s26 + $0x15a] sm:$0xff]  ;;  %v2902_v21 = vld [vmem:[%s3896_s26 + $0x16c] sm:$0xff] }
 0x2a4   : > { %3729 = vmatmul.msk.f32.gmra.mxu3 %vm293_vm1, %v2557_v51  ;;  %3771 = vmatmul.msk.f32.gmra.mxu0 %vm293_vm1, %v5047_v5 }
 0x2a5   : > { %v3224_v8 = vmax.f32 %v3184_v36, 0.0 }
 0x2a6   : > { %v2413_v24 = vpop.f32.mrf.mxu2 }
 0x2a7   : > { %3264 = vst [vmem:[%s4864_s14 + $0x78] sm:$0xff] %v3224_v8  ;;  %v2501_v47 = vadd.f32 %v2413_v24, %v2159_v33  ;;  %v2755_v25 = vpop.f32.mrf.mxu3  ;;  %v2219_v24 = vld [vmem:[%s3896_s26 + $0x170] sm:$0xff] }
 0x2a8   : > { %v2074_v39 = vpop.f32.mrf.mxu1 }
 0x2a9   : > { %v2843_v60 = vadd.f32 %v2755_v25, %v2501_v47  ;;  %v3100_v55 = vpop.f32.mrf.mxu0  ;;  %v2160_v23 = vadd.f32 %v2074_v39, %v4603_v7  ;;  %v2561_v25 = vld [vmem:[%s3896_s26 + $0x172] sm:$0xff] }
 0x2aa   : > { %v2903_v39 = vld [vmem:[%s3896_s26 + $0x174] sm:$0xff] }
 0x2ab   : > { %v3185_v14 = vadd.f32 %v3097_v27, %v2843_v60  ;;  %3646 = vmatmul.msk.f32.gmra.mxu1 %vm293_vm1, %v4995_v30  ;;  %3688 = vmatmul.msk.f32.gmra.mxu2 %vm293_vm1, %v2216_v13  ;;  %v2559_v30 = vld [vmem:[%s3896_s26 + $0x162] sm:$0xff] }
 0x2ac   : > { %3730 = vmatmul.msk.f32.gmra.mxu3 %vm293_vm1, %v2558_v49  ;;  %3772 = vmatmul.msk.f32.gmra.mxu0 %vm293_vm1, %v5060_v38 }
 0x2ad   : > { %v3225_v45 = vmax.f32 %v3185_v14, 0.0 }
 0x2ae   : > { %v2416_v6 = vpop.f32.mrf.mxu2 }
 0x2af   : > { %3265 = vst [vmem:[%s4864_s14 + $0x80] sm:$0xff] %v3225_v45  ;;  %v2502_v4 = vadd.f32 %v2416_v6, %v2160_v23  ;;  %v2758_v61 = vpop.f32.mrf.mxu3  ;;  %v2220_v45 = vld [vmem:[%s3896_s26 + $0x178] sm:$0xff] }
 0x2b0   : > { %v2077_v2 = vpop.f32.mrf.mxu1 }
 0x2b1   : > { %v2844_v35 = vadd.f32 %v2758_v61, %v2502_v4  ;;  %v3103_v54 = vpop.f32.mrf.mxu0  ;;  %v2161_v7 = vadd.f32 %v2077_v2, %v4616_v44  ;;  %v2562_v4 = vld [vmem:[%s3896_s26 + $0x17a] sm:$0xff] }
 0x2b2   : > { %v2904_v61 = vld [vmem:[%s3896_s26 + $0x17c] sm:$0xff] }
 0x2b3   : > { %v3186_v59 = vadd.f32 %v3100_v55, %v2844_v35  ;;  %3647 = vmatmul.msk.f32.gmra.mxu1 %vm293_vm1, %v5008_v3  ;;  %3689 = vmatmul.msk.f32.gmra.mxu2 %vm293_vm1, %v2217_v57  ;;  %v2560_v3 = vld [vmem:[%s3896_s26 + $0x16a] sm:$0xff] }
 0x2b4   : > { %3731 = vmatmul.msk.f32.gmra.mxu3 %vm293_vm1, %v2559_v30  ;;  %3773 = vmatmul.msk.f32.gmra.mxu0 %vm293_vm1, %v5073_v11 }
 0x2b5   : > { %v3226_v28 = vmax.f32 %v3186_v59, 0.0 }
 0x2b6   : > { %v2419_v41 = vpop.f32.mrf.mxu2 }
 0x2b7   : > { %3266 = vst [vmem:[%s4864_s14 + $0x88] sm:$0xff] %v3226_v28  ;;  %v2503_v20 = vadd.f32 %v2419_v41, %v2161_v7  ;;  %v2761_v48 = vpop.f32.mrf.mxu3  ;;  %v2221_v7 = vld [vmem:[%s3896_s26 + $0x180] sm:$0xff] }
 0x2b8   : > { %v2080_v52 = vpop.f32.mrf.mxu1  ;;  %v2563_v41 = vld [vmem:[%s3896_s26 + $0x182] sm:$0xff] }
 0x2b9   : > { %v2845_v16 = vadd.f32 %v2761_v48, %v2503_v20  ;;  %v3106_v40 = vpop.f32.mrf.mxu0  ;;  %v2162_v44 = vadd.f32 %v2080_v52, %v4627_v37  ;;  %v2905_v20 = vld [vmem:[%s3896_s26 + $0x184] sm:$0xff] }
 0x2bb   : > { %v3187_v58 = vadd.f32 %v3103_v54, %v2845_v16  ;;  %3648 = vmatmul.msk.f32.gmra.mxu1 %vm293_vm1, %v5021_v29  ;;  %3690 = vmatmul.msk.f32.gmra.mxu2 %vm293_vm1, %v2218_v63 }
 0x2bc   : > { %3732 = vmatmul.msk.f32.gmra.mxu3 %vm293_vm1, %v2560_v3  ;;  %3774 = vmatmul.msk.f32.gmra.mxu0 %vm293_vm1, %v2902_v21  ;;  %v2222_v21 = vld [vmem:[%s3896_s26 + $0x188] sm:$0xff] }
 0x2bd   : > { %v3227_v51 = vmax.f32 %v3187_v58, 0.0 }
 0x2be   : > { %v2422_v27 = vpop.f32.mrf.mxu2 }
 0x2bf   : > { %3267 = vst [vmem:[%s4864_s14 + $0x90] sm:$0xff] %v3227_v51  ;;  %v2504_v36 = vadd.f32 %v2422_v27, %v2162_v44  ;;  %v2764_v33 = vpop.f32.mrf.mxu3  ;;  %v2564_v44 = vld [vmem:[%s3896_s26 + $0x18a] sm:$0xff] }
 0x2c0   : > { %v2083_v8 = vpop.f32.mrf.mxu1 }
 0x2c1   : > { %v2846_v47 = vadd.f32 %v2764_v33, %v2504_v36  ;;  %v3109_v29 = vpop.f32.mrf.mxu0  ;;  %v2163_v37 = vadd.f32 %v2083_v8, %v4638_v56 }
 0x2c3   : > { %v3188_v13 = vadd.f32 %v3106_v40, %v2846_v47  ;;  %3649 = vmatmul.msk.f32.gmra.mxu1 %vm293_vm1, %v5034_v50  ;;  %3691 = vmatmul.msk.f32.gmra.mxu2 %vm293_vm1, %v2219_v24 }
 0x2c4   : > { %3733 = vmatmul.msk.f32.gmra.mxu3 %vm293_vm1, %v2561_v25  ;;  %3775 = vmatmul.msk.f32.gmra.mxu0 %vm293_vm1, %v2903_v39 }
 0x2c5   : > { %v3228_v60 = vmax.f32 %v3188_v13, 0.0 }
 0x2c6   : > { %v2425_v49 = vpop.f32.mrf.mxu2 }
 0x2c7   : > { %3268 = vst [vmem:[%s4864_s14 + $0x98] sm:$0xff] %v3228_v60  ;;  %v2505_v55 = vadd.f32 %v2425_v49, %v2163_v37  ;;  %v2767_v14 = vpop.f32.mrf.mxu3 }
 0x2c8   : > { %v2086_v23 = vpop.f32.mrf.mxu1 }
 0x2c9   : > { %v2847_v6 = vadd.f32 %v2767_v14, %v2505_v55  ;;  %v3112_v50 = vpop.f32.mrf.mxu0  ;;  %v2164_v56 = vadd.f32 %v2086_v23, %v4649_v32 }
 0x2cb   : > { %v3189_v2 = vadd.f32 %v3109_v29, %v2847_v6  ;;  %3650 = vmatmul.msk.f32.gmra.mxu1 %vm293_vm1, %v5047_v5  ;;  %3692 = vmatmul.msk.f32.gmra.mxu2 %vm293_vm1, %v2220_v45 }
 0x2cc   : > { %3734 = vmatmul.msk.f32.gmra.mxu3 %vm293_vm1, %v2562_v4  ;;  %3776 = vmatmul.msk.f32.gmra.mxu0 %vm293_vm1, %v2904_v61 }
 0x2cd   : > { %v3229_v57 = vmax.f32 %v3189_v2, 0.0 }
 0x2ce   : > { %v2428_v35 = vpop.f32.mrf.mxu2 }
 0x2cf   : > { %3269 = vst [vmem:[%s4864_s14 + $0xa0] sm:$0xff] %v3229_v57  ;;  %v2506_v30 = vadd.f32 %v2428_v35, %v2164_v56  ;;  %v2770_v54 = vpop.f32.mrf.mxu3 }
 0x2d0   : > { %v2089_v59 = vpop.f32.mrf.mxu1 }
 0x2d1   : > { %v2848_v28 = vadd.f32 %v2770_v54, %v2506_v30  ;;  %v3115_v5 = vpop.f32.mrf.mxu0  ;;  %v2165_v32 = vadd.f32 %v2089_v59, %v4660_v12 }
 0x2d3   : > { %v3190_v48 = vadd.f32 %v3112_v50, %v2848_v28  ;;  %3651 = vmatmul.msk.f32.gmra.mxu1 %vm293_vm1, %v5060_v38  ;;  %3693 = vmatmul.msk.f32.gmra.mxu2 %vm293_vm1, %v2221_v7  ;;  %v2906_v38 = vld [vmem:[%s3896_s26 + $0x18c] sm:$0xff] }
 0x2d4   : > { %3735 = vmatmul.msk.f32.gmra.mxu3 %vm293_vm1, %v2563_v41  ;;  %3777 = vmatmul.msk.f32.gmra.mxu0 %vm293_vm1, %v2905_v20 }
 0x2d5   : > { %v3230_v52 = vmax.f32 %v3190_v48, 0.0 }
 0x2d6   : > { %v2431_v63 = vpop.f32.mrf.mxu2 }
 0x2d7   : > { %3270 = vst [vmem:[%s4864_s14 + $0xa8] sm:$0xff] %v3230_v52  ;;  %v2507_v16 = vadd.f32 %v2431_v63, %v2165_v32  ;;  %v2773_v3 = vpop.f32.mrf.mxu3 }
 0x2d8   : > { %v2092_v40 = vpop.f32.mrf.mxu1 }
 0x2d9   : > { %v2849_v58 = vadd.f32 %v2773_v3, %v2507_v16  ;;  %v3118_v51 = vpop.f32.mrf.mxu0  ;;  %v2166_v12 = vadd.f32 %v2092_v40, %v4669_v34 }
 0x2db   : > { %v3191_v27 = vadd.f32 %v3115_v5, %v2849_v58  ;;  %3652 = vmatmul.msk.f32.gmra.mxu1 %vm293_vm1, %v5073_v11  ;;  %3694 = vmatmul.msk.f32.gmra.mxu2 %vm293_vm1, %v2222_v21 }
 0x2dc   : > { %3736 = vmatmul.msk.f32.gmra.mxu3 %vm293_vm1, %v2564_v44  ;;  %3778 = vmatmul.msk.f32.gmra.mxu0 %vm293_vm1, %v2906_v38 }
 0x2dd   : > { %v3231_v36 = vmax.f32 %v3191_v27, 0.0 }
 0x2de   : > { %v2434_v33 = vpop.f32.mrf.mxu2 }
 0x2df   : > { %3271 = vst [vmem:[%s4864_s14 + $0xb0] sm:$0xff] %v3231_v36  ;;  %v2508_v8 = vadd.f32 %v2434_v33, %v2166_v12  ;;  %v2776_v24 = vpop.f32.mrf.mxu3 }
 0x2e0   : > { %v2095_v47 = vpop.f32.mrf.mxu1 }
 0x2e1   : > { %v2850_v25 = vadd.f32 %v2776_v24, %v2508_v8  ;;  %v3121_v29 = vpop.f32.mrf.mxu0  ;;  %v2167_v11 = vadd.f32 %v2095_v47, %v4682_v1 }
 0x2e3   : > { %v3192_v39 = vadd.f32 %v3118_v51, %v2850_v25 }
 0x2e5   : > { %v3232_v13 = vmax.f32 %v3192_v39, 0.0 }
 0x2e6   : > { %v2437_v37 = vpop.f32.mrf.mxu2 }
 0x2e7   : > { %3272 = vst [vmem:[%s4864_s14 + $0xb8] sm:$0xff] %v3232_v13  ;;  %v2509_v60 = vadd.f32 %v2437_v37, %v2167_v11  ;;  %v2779_v49 = vpop.f32.mrf.mxu3 }
 0x2e8   : > { %v2098_v55 = vpop.f32.mrf.mxu1 }
 0x2e9   : > { %v2851_v14 = vadd.f32 %v2779_v49, %v2509_v60  ;;  %v3124_v34 = vpop.f32.mrf.mxu0  ;;  %v2168_v45 = vadd.f32 %v2098_v55, %v4693_v31 }
 0x2eb   : > { %v3193_v23 = vadd.f32 %v3121_v29, %v2851_v14 }
 0x2ed   : > { %v3233_v6 = vmax.f32 %v3193_v23, 0.0 }
 0x2ee   : > { %v2440_v4 = vpop.f32.mrf.mxu2 }
 0x2ef   : > { %3273 = vst [vmem:[%s4864_s14 + $0xc0] sm:$0xff] %v3233_v6  ;;  %v2510_v50 = vadd.f32 %v2440_v4, %v2168_v45  ;;  %v2782_v61 = vpop.f32.mrf.mxu3 }
 0x2f0   : > { %v2101_v2 = vpop.f32.mrf.mxu1 }
 0x2f1   : > { %v2852_v56 = vadd.f32 %v2782_v61, %v2510_v50  ;;  %v3127_v1 = vpop.f32.mrf.mxu0  ;;  %v2169_v35 = vadd.f32 %v2101_v2, %v4704_v53 }
 0x2f3   : > { %v3194_v57 = vadd.f32 %v3124_v34, %v2852_v56 }
 0x2f5   : > { %v3234_v30 = vmax.f32 %v3194_v57, 0.0 }
 0x2f6   : > { %v2443_v54 = vpop.f32.mrf.mxu2 }
 0x2f7   : > { %3274 = vst [vmem:[%s4864_s14 + $0xc8] sm:$0xff] %v3234_v30  ;;  %v2511_v59 = vadd.f32 %v2443_v54, %v2169_v35  ;;  %v2785_v7 = vpop.f32.mrf.mxu3 }
 0x2f8   : > { %v2104_v28 = vpop.f32.mrf.mxu1 }
 0x2f9   : > { %v2853_v41 = vadd.f32 %v2785_v7, %v2511_v59  ;;  %v3130_v31 = vpop.f32.mrf.mxu0  ;;  %v2170_v20 = vadd.f32 %v2104_v28, %v4715_v22 }
 0x2fb   : > { %v3195_v5 = vadd.f32 %v3127_v1, %v2853_v41 }
 0x2fd   : > { %v3235_v48 = vmax.f32 %v3195_v5, 0.0 }
 0x2fe   : > { %v2446_v32 = vpop.f32.mrf.mxu2 }
 0x2ff   : > { %3275 = vst [vmem:[%s4864_s14 + $0xd0] sm:$0xff] %v3235_v48  ;;  %v2512_v52 = vadd.f32 %v2446_v32, %v2170_v20  ;;  %v2788_v63 = vpop.f32.mrf.mxu3 }
 0x300   : > { %v2107_v16 = vpop.f32.mrf.mxu1 }
 0x301   : > { %v2854_v3 = vadd.f32 %v2788_v63, %v2512_v52  ;;  %v3133_v53 = vpop.f32.mrf.mxu0  ;;  %v2171_v21 = vadd.f32 %v2107_v16, %v4726_v62 }
 0x303   : > { %v3196_v40 = vadd.f32 %v3130_v31, %v2854_v3 }
 0x305   : > { %v3236_v58 = vmax.f32 %v3196_v40, 0.0 }
 0x306   : > { %v2449_v44 = vpop.f32.mrf.mxu2 }
 0x307   : > { %3276 = vst [vmem:[%s4864_s14 + $0xd8] sm:$0xff] %v3236_v58  ;;  %v2513_v51 = vadd.f32 %v2449_v44, %v2171_v21  ;;  %v2791_v38 = vpop.f32.mrf.mxu3 }
 0x308   : > { %v2110_v27 = vpop.f32.mrf.mxu1 }
 0x309   : > { %v2855_v12 = vadd.f32 %v2791_v38, %v2513_v51  ;;  %v3136_v22 = vpop.f32.mrf.mxu0  ;;  %v2172_v33 = vadd.f32 %v2110_v27, %v4737_v19 }
 0x30b   : > { %v3197_v36 = vadd.f32 %v3133_v53, %v2855_v12 }
 0x30d   : > { %v3237_v8 = vmax.f32 %v3197_v36, 0.0 }
 0x30e   : > { %v2452_v24 = vpop.f32.mrf.mxu2 }
 0x30f   : > { %3277 = vst [vmem:[%s4864_s14 + $0xe0] sm:$0xff] %v3237_v8  ;;  %v2514_v47 = vadd.f32 %v2452_v24, %v2172_v33  ;;  %v2794_v25 = vpop.f32.mrf.mxu3 }
 0x310   : > { %v2113_v29 = vpop.f32.mrf.mxu1 }
 0x311   : > { %v2856_v39 = vadd.f32 %v2794_v25, %v2514_v47  ;;  %v3139_v62 = vpop.f32.mrf.mxu0  ;;  %v2173_v13 = vadd.f32 %v2113_v29, %v4748_v46 }
 0x313   : > { %v3198_v11 = vadd.f32 %v3136_v22, %v2856_v39 }
 0x315   : > { %v3238_v37 = vmax.f32 %v3198_v11, 0.0 }
 0x316   : > { %v2455_v60 = vpop.f32.mrf.mxu2 }
 0x317   : > { %3278 = vst [vmem:[%s4864_s14 + $0xe8] sm:$0xff] %v3238_v37  ;;  %v2515_v49 = vadd.f32 %v2455_v60, %v2173_v13  ;;  %v2797_v55 = vpop.f32.mrf.mxu3 }
 0x318   : > { %v2116_v14 = vpop.f32.mrf.mxu1 }
 0x319   : > { %v2857_v34 = vadd.f32 %v2797_v55, %v2515_v49  ;;  %v3142_v19 = vpop.f32.mrf.mxu0  ;;  %v2174_v45 = vadd.f32 %v2116_v14, %v4759_v0 }
 0x31b   : > { %v3199_v23 = vadd.f32 %v3139_v62, %v2857_v34 }
 0x31d   : > { %v3239_v6 = vmax.f32 %v3199_v23, 0.0 }
 0x31e   : > { %v2458_v4 = vpop.f32.mrf.mxu2 }
 0x31f   : > { %3279 = vst [vmem:[%s4864_s14 + $0xf0] sm:$0xff] %v3239_v6  ;;  %v2516_v50 = vadd.f32 %v2458_v4, %v2174_v45  ;;  %v2800_v61 = vpop.f32.mrf.mxu3 }
 0x320   : > { %v2119_v2 = vpop.f32.mrf.mxu1 }
 0x321   : > { %v2858_v56 = vadd.f32 %v2800_v61, %v2516_v50  ;;  %v3145_v46 = vpop.f32.mrf.mxu0  ;;  %v2175_v57 = vadd.f32 %v2119_v2, %v4770_v43 }
 0x323   : > { %v3200_v1 = vadd.f32 %v3142_v19, %v2858_v56 }
 0x325   : > { %v3240_v35 = vmax.f32 %v3200_v1, 0.0 }
 0x326   : > { %v2461_v30 = vpop.f32.mrf.mxu2 }
 0x327   : > { %3280 = vst [vmem:[%s4864_s14 + $0xf8] sm:$0xff] %v3240_v35  ;;  %v2517_v54 = vadd.f32 %v2461_v30, %v2175_v57  ;;  %v2803_v59 = vpop.f32.mrf.mxu3 }
 0x328   : > { %v2122_v7 = vpop.f32.mrf.mxu1 }
 0x329   : > { %v2859_v28 = vadd.f32 %v2803_v59, %v2517_v54  ;;  %v3148_v0 = vpop.f32.mrf.mxu0  ;;  %v2176_v31 = vadd.f32 %v2122_v7, %v4781_v26 }
 0x32b   : > { %v3201_v41 = vadd.f32 %v3145_v46, %v2859_v28 }
 0x32d   : > { %v3241_v5 = vmax.f32 %v3201_v41, 0.0 }
 0x32e   : > { %v2464_v20 = vpop.f32.mrf.mxu2 }
 0x32f   : > { %3281 = vst [vmem:[%s4864_s14 + $0x100] sm:$0xff] %v3241_v5  ;;  %v2518_v48 = vadd.f32 %v2464_v20, %v2176_v31  ;;  %v2806_v32 = vpop.f32.mrf.mxu3 }
 0x330   : > { %v2125_v52 = vpop.f32.mrf.mxu1 }
 0x331   : > { %v2860_v63 = vadd.f32 %v2806_v32, %v2518_v48  ;;  %v3151_v43 = vpop.f32.mrf.mxu0  ;;  %v2177_v3 = vadd.f32 %v2125_v52, %v4792_v9 }
 0x333   : > { %v3202_v16 = vadd.f32 %v3148_v0, %v2860_v63 }
 0x335   : > { %v3242_v53 = vmax.f32 %v3202_v16, 0.0 }
 0x336   : > { %v2467_v40 = vpop.f32.mrf.mxu2 }
 0x337   : > { %3282 = vst [vmem:[%s4864_s14 + $0x108] sm:$0xff] %v3242_v53  ;;  %v2519_v21 = vadd.f32 %v2467_v40, %v2177_v3  ;;  %v2809_v58 = vpop.f32.mrf.mxu3 }
 0x338   : > { %v2128_v44 = vpop.f32.mrf.mxu1 }
 0x339   : > { %v2861_v51 = vadd.f32 %v2809_v58, %v2519_v21  ;;  %v3154_v26 = vpop.f32.mrf.mxu0  ;;  %v2178_v27 = vadd.f32 %v2128_v44, %v4803_v10 }
 0x33b   : > { %v3203_v38 = vadd.f32 %v3151_v43, %v2861_v51 }
 0x33d   : > { %v3243_v12 = vmax.f32 %v3203_v38, 0.0 }
 0x33e   : > { %v2470_v22 = vpop.f32.mrf.mxu2 }
 0x33f   : > { %3283 = vst [vmem:[%s4864_s14 + $0x110] sm:$0xff] %v3243_v12  ;;  %v2520_v36 = vadd.f32 %v2470_v22, %v2178_v27  ;;  %v2812_v33 = vpop.f32.mrf.mxu3 }
 0x340   : > { %v2131_v8 = vpop.f32.mrf.mxu1 }
 0x341   : > { %v2862_v24 = vadd.f32 %v2812_v33, %v2520_v36  ;;  %v3157_v9 = vpop.f32.mrf.mxu0  ;;  %v2179_v25 = vadd.f32 %v2131_v8, %v4814_v15 }
 0x343   : > { %v3204_v47 = vadd.f32 %v3154_v26, %v2862_v24 }
 0x345   : > { %v3244_v29 = vmax.f32 %v3204_v47, 0.0 }
 0x346   : > { %v2473_v39 = vpop.f32.mrf.mxu2 }
 0x347   : > { %3284 = vst [vmem:[%s4864_s14 + $0x118] sm:$0xff] %v3244_v29  ;;  %v2521_v62 = vadd.f32 %v2473_v39, %v2179_v25  ;;  %v2815_v11 = vpop.f32.mrf.mxu3 }
 0x348   : > { %v2134_v13 = vpop.f32.mrf.mxu1 }
 0x349   : > { %v2863_v37 = vadd.f32 %v2815_v11, %v2521_v62  ;;  %v3160_v60 = vpop.f32.mrf.mxu0  ;;  %v2180_v49 = vadd.f32 %v2134_v13, %v4825_v42 }
 0x34b   : > { %v3205_v10 = vadd.f32 %v3157_v9, %v2863_v37 }
 0x34d   : > { %v3245_v55 = vmax.f32 %v3205_v10, 0.0 }
 0x34e   : > { %v2476_v14 = vpop.f32.mrf.mxu2 }
 0x34f   : > { %3285 = vst [vmem:[%s4864_s14 + $0x120] sm:$0xff] %v3245_v55  ;;  %v2522_v34 = vadd.f32 %v2476_v14, %v2180_v49  ;;  %v2818_v19 = vpop.f32.mrf.mxu3 }
 0x350   : > { %v2137_v23 = vpop.f32.mrf.mxu1 }
 0x351   : > { %v2864_v15 = vadd.f32 %v2818_v19, %v2522_v34  ;;  %v2181_v6 = vadd.f32 %v2137_v23, %v4836_v18  ;;  %v3163_v61 = vpop.f32.mrf.mxu0 }
 0x353   : > { %v3206_v45 = vadd.f32 %v3160_v60, %v2864_v15 }
 0x355   : > { %v3246_v4 = vmax.f32 %v3206_v45, 0.0 }
 0x356   : > { %v2479_v50 = vpop.f32.mrf.mxu2 }
 0x357   : > { %3286 = vst [vmem:[%s4864_s14 + $0x128] sm:$0xff] %v3246_v4  ;;  %v2523_v2 = vadd.f32 %v2479_v50, %v2181_v6  ;;  %v2821_v56 = vpop.f32.mrf.mxu3 }
 0x358   : > { %v2140_v42 = vpop.f32.mrf.mxu1 }
 0x359   : > { %v2865_v46 = vadd.f32 %v2821_v56, %v2523_v2  ;;  %v2182_v57 = vadd.f32 %v2140_v42, %v4847_v17  ;;  %v3166_v7 = vpop.f32.mrf.mxu0 }
 0x35b   : > { %v3207_v1 = vadd.f32 %v3163_v61, %v2865_v46 }
 0x35d   : > { %v3247_v35 = vmax.f32 %v3207_v1, 0.0 }
 0x35e   : > { %v2482_v30 = vpop.f32.mrf.mxu2 }
 0x35f   : > { %3287 = vst [vmem:[%s4864_s14 + $0x130] sm:$0xff] %v3247_v35  ;;  %v2524_v54 = vadd.f32 %v2482_v30, %v2182_v57  ;;  %v2824_v59 = vpop.f32.mrf.mxu3 }
 0x361   : > { %v2866_v28 = vadd.f32 %v2824_v59, %v2524_v54 }
 0x363   : > { %v3208_v18 = vadd.f32 %v3166_v7, %v2866_v28 }
 0x365   : > { %v3248_v0 = vmax.f32 %v3208_v18, 0.0 }
 0x367   : > { %3288 = vst [vmem:[%s4864_s14 + $0x138] sm:$0xff] %v3248_v0 }
 0x368 PF: > { %s12_s11 = sadd.s32 1, %s3832_s11   ;;  %s5226_s9 = smov %s3828_s10 }
 0x369   : > { %p9_p5 = scmp.ge.s32.totalorder %s12_s11, 4   ;;  %s5227_s10 = smov %s5229_s12 }
 0x36b   :  { %11 = sbr.rel (!%p9_p5) target bundleno = 2 (0x2), region = 69 }

</bundles_post_ra>
